<compile_context>
chip_gen: v6e
topology: v6e:2x2x1
jax: 0.10.0
libtpu: 0.0.40
codegen_flags: <defaults>
</compile_context>

<pallas_src>
import functools
import math

import jax
import jax.numpy as jnp
from jax.experimental import pallas as pl
from jax.experimental.pallas import tpu as pltpu

# ----------------------------- model config ---------------------------------
BERT_FEATURE_DIM = 128      # args.bert_feature_dim
MAX_SEQUENCE_LEN = 64       # args.max_sequence_len -> dep vocab = 2*64 - 1 = 127
LAYERS_NUM       = 2        # args.layers_num
ABLATION         = 0        # args.ablation_learner
FFN_DIM          = 3072     # hardcoded in EncoderLayer
LN_EPS           = 1e-5     # PyTorch LayerNorm default
FFN_TILE         = 1024     # FFN reduction tile (3072 / 1024 = 3 grid steps per layer)
WEIGHT_DTYPE     = jnp.bfloat16

BATCH = 2
SEQ   = 8


# ----------------------------- math helpers ----------------------------------
def _layernorm(x, gamma, beta):
    # PyTorch LayerNorm over last dim, biased variance, eps=1e-5.
    mean = jnp.mean(x, axis=-1, keepdims=True)
    xc = x - mean
    var = jnp.mean(xc * xc, axis=-1, keepdims=True)
    inv = jax.lax.rsqrt(var + LN_EPS)
    return xc * inv * gamma + beta


def _gelu_exact(x):
    # nn.GELU() default: exact erf GELU.
    return 0.5 * x * (1.0 + jax.lax.erf(x * (1.0 / math.sqrt(2.0))))


# ----------------------------- fused Pallas kernel ----------------------------
def _fused_encoder_kernel(x_ref, w1_ref, b1_ref, w2_ref, b2_ref, g_ref, be_ref,
                          pw_ref, pb_ref, o_ref, x_sc, acc_sc):
    # grid = (layer, ffn_tile); both axes sequential ("arbitrary").
    l = pl.program_id(0)
    k = pl.program_id(1)
    nl = pl.num_programs(0)
    nk = pl.num_programs(1)

    # Load the (pre-LN'd, summed) embeddings into the carried activation once.
    @pl.when(jnp.logical_and(l == 0, k == 0))
    def _():
        x_sc[...] = x_ref[...]

    # Zero the FFN-output accumulator at the start of each layer.
    @pl.when(k == 0)
    def _():
        acc_sc[...] = jnp.zeros_like(acc_sc)

    # One FFN tile: h = GELU(x @ W1[:, kT:(k+1)T] + b1_tile);  acc += h @ W2[tile, :]
    xb = x_sc[...].astype(w1_ref.dtype)
    h = jnp.dot(xb, w1_ref[...], preferred_element_type=jnp.float32) + b1_ref[...]
    h = _gelu_exact(h)
    acc_sc[...] += jnp.dot(h.astype(w2_ref.dtype), w2_ref[...],
                           preferred_element_type=jnp.float32)

    # Layer epilogue: output-projection bias + LayerNorm, carried into x for next layer.
    @pl.when(k == nk - 1)
    def _():
        y = acc_sc[...] + b2_ref[...]
        x_sc[...] = _layernorm(y, g_ref[...], be_ref[...])

    # Final step: pooler + tanh, write the single output block.
    @pl.when(jnp.logical_and(l == nl - 1, k == nk - 1))
    def _():
        p = jnp.dot(x_sc[...].astype(pw_ref.dtype), pw_ref[...],
                    preferred_element_type=jnp.float32) + pb_ref[...]
        o_ref[...] = jnp.tanh(p)


def fused_encoder(x, stk, pool_w, pool_b, *, ffn_tile=FFN_TILE):
    n, d = x.shape
    num_layers, _, f = stk["w1"].shape
    assert f % ffn_tile == 0
    kt = f // ffn_tile

    return pl.pallas_call(
        _fused_encoder_kernel,
        out_shape=jax.ShapeDtypeStruct((n, d), jnp.float32),
        grid=(num_layers, kt),
        in_specs=[
            pl.BlockSpec((n, d), lambda l, k: (0, 0)),                    # x (read once)
            pl.BlockSpec((None, d, ffn_tile), lambda l, k: (l, 0, k)),    # W1 tile (bf16)
            pl.BlockSpec((None, 1, ffn_tile), lambda l, k: (l, 0, k)),    # b1 tile (f32)
            pl.BlockSpec((None, ffn_tile, d), lambda l, k: (l, k, 0)),    # W2 tile (bf16)
            pl.BlockSpec((None, 1, d), lambda l, k: (l, 0, 0)),           # b2
            pl.BlockSpec((None, 1, d), lambda l, k: (l, 0, 0)),           # LN gamma
            pl.BlockSpec((None, 1, d), lambda l, k: (l, 0, 0)),           # LN beta
            pl.BlockSpec((d, d), lambda l, k: (0, 0)),                    # pooler W (bf16)
            pl.BlockSpec((1, d), lambda l, k: (0, 0)),                    # pooler b
        ],
        out_specs=pl.BlockSpec((n, d), lambda l, k: (0, 0)),
        scratch_shapes=[pltpu.VMEM((n, d), jnp.float32),    # carried activation x
                        pltpu.VMEM((n, d), jnp.float32)],   # FFN-output accumulator
        compiler_params=pltpu.CompilerParams(
            dimension_semantics=("arbitrary", "arbitrary")),
    )(x, stk["w1"], stk["b1"], stk["w2"], stk["b2"],
      stk["ln_g"], stk["ln_b"], pool_w, pool_b)


# ----------------------------- full forward -----------------------------------
@functools.partial(jax.jit, static_argnames=("ablation",))
def pd_encoder_forward(pos_ids, dep_ids, prepped, *, ablation=ABLATION):
    b, s = pos_ids.shape
    d = prepped["pool_b"].shape[-1]

    # Embedding gather of pre-LayerNorm'd tables (LN is per-row and commutes with the
    # gather; padding row 0 still maps to beta, exactly as in PyTorch) + add.
    # Dropout(0.1) layers are identity in eval.
    pos_e = jnp.take(prepped["pos_tbl"], pos_ids.reshape(-1), axis=0)
    dep_e = jnp.take(prepped["dep_tbl"], dep_ids.reshape(-1), axis=0)
    x = pos_e + dep_e                                   # (B*S, D) f32

    if ablation == 1:
        return x.reshape(b, s, d)

    out = fused_encoder(x, prepped["stk"], prepped["pool_w"], prepped["pool_b"])
    return out.reshape(b, s, d)


# ----------------------------- parameters -------------------------------------
def init_params(key, d=BERT_FEATURE_DIM, f=FFN_DIM, layers=LAYERS_NUM,
                max_seq_len=MAX_SEQUENCE_LEN):
    keys = jax.random.split(key, 4 + 2 * layers)
    scale = 0.02

    pos_emb = scale * jax.random.normal(keys[0], (20, d), jnp.float32)
    pos_emb = pos_emb.at[0].set(0.0)                       # padding_idx=0
    dep_emb = scale * jax.random.normal(keys[1], (2 * max_seq_len - 1, d), jnp.float32)
    dep_emb = dep_emb.at[0].set(0.0)                       # padding_idx=0

    layer_params = []
    for li in range(layers):
        k1, k2 = keys[2 + 2 * li], keys[3 + 2 * li]
        layer_params.append(dict(
            # Linear weights stored as (in, out); equivalent to torch W.T.
            w1=scale * jax.random.normal(k1, (d, f), jnp.float32),
            b1=jnp.zeros((1, f), jnp.float32),
            w2=scale * jax.random.normal(k2, (f, d), jnp.float32),
            b2=jnp.zeros((1, d), jnp.float32),
            ln_g=jnp.ones((1, d), jnp.float32),
            ln_b=jnp.zeros((1, d), jnp.float32),
        ))

    return dict(
        pos_emb=pos_emb,
        dep_emb=dep_emb,
        ln_g=jnp.ones((1, d), jnp.float32),
        ln_b=jnp.zeros((1, d), jnp.float32),
        layers=layer_params,
        pool_w=scale * jax.random.normal(keys[2 + 2 * layers], (d, d), jnp.float32),
        pool_b=jnp.zeros((1, d), jnp.float32),
    )


def preprocess_params(params, weight_dtype=WEIGHT_DTYPE):
    """One-time prep: pre-LayerNorm embedding tables, stack + downcast layer weights."""
    ln_g, ln_b = params["ln_g"], params["ln_b"]
    pos_tbl = _layernorm(params["pos_emb"], ln_g, ln_b)            # (20, D) f32
    dep_tbl = _layernorm(params["dep_emb"], ln_g, ln_b)            # (127, D) f32
    stk = dict(
        w1=jnp.stack([lp["w1"] for lp in params["layers"]]).astype(weight_dtype),  # (L,D,F)
        b1=jnp.stack([lp["b1"] for lp in params["layers"]]),                       # (L,1,F)
        w2=jnp.stack([lp["w2"] for lp in params["layers"]]).astype(weight_dtype),  # (L,F,D)
        b2=jnp.stack([lp["b2"] for lp in params["layers"]]),                       # (L,1,D)
        ln_g=jnp.stack([lp["ln_g"] for lp in params["layers"]]),                   # (L,1,D)
        ln_b=jnp.stack([lp["ln_b"] for lp in params["layers"]]),                   # (L,1,D)
    )
    return dict(
        pos_tbl=pos_tbl, dep_tbl=dep_tbl, stk=stk,
        pool_w=params["pool_w"].astype(weight_dtype),
        pool_b=params["pool_b"],
    )


# ----------------------------- pure-JAX reference ------------------------------
def pd_encoder_reference(pos_ids, dep_ids, params, ablation=ABLATION):
    b, s = pos_ids.shape
    d = params["ln_g"].shape[-1]
    pos_e = _layernorm(jnp.take(params["pos_emb"], pos_ids.reshape(-1), axis=0),
                       params["ln_g"], params["ln_b"])
    dep_e = _layernorm(jnp.take(params["dep_emb"], dep_ids.reshape(-1), axis=0),
                       params["ln_g"], params["ln_b"])
    x = pos_e + dep_e
    if ablation == 1:
        return x.reshape(b, s, d)
    for lp in params["layers"]:
        h = _gelu_exact(x @ lp["w1"] + lp["b1"])
        y = h @ lp["w2"] + lp["b2"]
        x = _layernorm(y, lp["ln_g"], lp["ln_b"])
    x = jnp.tanh(x @ params["pool_w"] + params["pool_b"])
    return x.reshape(b, s, d)


# ----------------------------- main --------------------------------------------
if __name__ == "__main__":
    key = jax.random.PRNGKey(0)
    kp, kd, kw = jax.random.split(key, 3)

    pos_ids = jax.random.randint(kp, (BATCH, SEQ), 0, 20, dtype=jnp.int32)
    dep_ids = jax.random.randint(kd, (BATCH, SEQ), 0, 2 * MAX_SEQUENCE_LEN - 1,
                                 dtype=jnp.int32)
    params = init_params(kw)
    prepped = preprocess_params(params)

    out = pd_encoder_forward(pos_ids, dep_ids, prepped)
    out = jax.block_until_ready(out)

    assert out.shape == (BATCH, SEQ, BERT_FEATURE_DIM), out.shape
    assert bool(jnp.all(jnp.isfinite(out)))

    # Sanity vs. f32 pure-JAX reference (loose tol: weights are fed as bf16).
    ref = pd_encoder_reference(pos_ids, dep_ids, params)
    max_err = float(jnp.max(jnp.abs(out - ref)))
    assert max_err < 5e-2, f"max abs err vs reference: {max_err}"

    print("KERNEL_OK")
</pallas_src>

<mosaic_0001>
module attributes {stable_mosaic.version = 11 : i64} {
  func.func @_fused_encoder_kernel(%arg0: i32, %arg1: i32, %arg2: memref<16x128xf32, #tpu.memory_space<vmem>>, %arg3: memref<1x128x1024xbf16, #tpu.memory_space<vmem>>, %arg4: memref<1x1x1024xf32, #tpu.memory_space<vmem>>, %arg5: memref<1x1024x128xbf16, #tpu.memory_space<vmem>>, %arg6: memref<1x1x128xf32, #tpu.memory_space<vmem>>, %arg7: memref<1x1x128xf32, #tpu.memory_space<vmem>>, %arg8: memref<1x1x128xf32, #tpu.memory_space<vmem>>, %arg9: memref<128x128xbf16, #tpu.memory_space<vmem>>, %arg10: memref<1x128xf32, #tpu.memory_space<vmem>>, %arg11: memref<16x128xf32, #tpu.memory_space<vmem>>, %arg12: memref<16x128xf32, #tpu.memory_space<vmem>>, %arg13: memref<16x128xf32, #tpu.memory_space<vmem>>) attributes {dimension_semantics = [#tpu.dimension_semantics<arbitrary>, #tpu.dimension_semantics<arbitrary>], iteration_bounds = array<i64: 2, 3>, scalar_prefetch = 0 : i64, scratch_operands = 2 : i64, tpu.core_type = #tpu.core_type<tc>, window_params = [{pipeline_mode = #tpu.pipeline_mode<synchronous>, transform_indices = @transform_0, window_bounds = array<i64: 16, 128>}, {transform_indices = @transform_1, window_bounds = array<i64: 1, 128, 1024>}, {transform_indices = @transform_2, window_bounds = array<i64: 1, 1, 1024>}, {transform_indices = @transform_3, window_bounds = array<i64: 1, 1024, 128>}, {transform_indices = @transform_4, window_bounds = array<i64: 1, 1, 128>}, {transform_indices = @transform_5, window_bounds = array<i64: 1, 1, 128>}, {transform_indices = @transform_6, window_bounds = array<i64: 1, 1, 128>}, {pipeline_mode = #tpu.pipeline_mode<synchronous>, transform_indices = @transform_7, window_bounds = array<i64: 128, 128>}, {pipeline_mode = #tpu.pipeline_mode<synchronous>, transform_indices = @transform_8, window_bounds = array<i64: 1, 128>}, {pipeline_mode = #tpu.pipeline_mode<synchronous>, transform_indices = @transform_9, window_bounds = array<i64: 16, 128>}]} {
    %c0_i32 = arith.constant 0 : i32
    %0 = arith.cmpi eq, %arg0, %c0_i32 : i32
    %c0_i32_0 = arith.constant 0 : i32
    %1 = arith.cmpi eq, %arg1, %c0_i32_0 : i32
    %2 = arith.andi %0, %1 : i1
    %3 = arith.extui %2 : i1 to i32
    %c0_i32_1 = arith.constant 0 : i32
    %4 = arith.cmpi ne, %3, %c0_i32_1 : i32
    scf.if %4 {
      %c0_25 = arith.constant 0 : index
      %c0_26 = arith.constant 0 : index
      %40 = vector.load %arg2[%c0_25, %c0_26] : memref<16x128xf32, #tpu.memory_space<vmem>>, vector<16x128xf32>
      %c0_27 = arith.constant 0 : index
      %c0_28 = arith.constant 0 : index
      %41 = vector.load %arg12[%c0_27, %c0_28] : memref<16x128xf32, #tpu.memory_space<vmem>>, vector<16x128xf32>
      tpu.vector_store %arg12[%c0_27, %c0_28], %40 {strides = array<i32>} : memref<16x128xf32, #tpu.memory_space<vmem>>, vector<16x128xf32>,
    } else {
    }
    %c0_i32_2 = arith.constant 0 : i32
    %5 = arith.cmpi eq, %arg1, %c0_i32_2 : i32
    %6 = arith.extui %5 : i1 to i32
    %c0_i32_3 = arith.constant 0 : i32
    %7 = arith.cmpi ne, %6, %c0_i32_3 : i32
    scf.if %7 {
      %cst_25 = arith.constant 0.000000e+00 : f32
      %40 = vector.broadcast %cst_25 : f32 to vector<16x128xf32>
      %c0_26 = arith.constant 0 : index
      %c0_27 = arith.constant 0 : index
      %41 = vector.load %arg13[%c0_26, %c0_27] : memref<16x128xf32, #tpu.memory_space<vmem>>, vector<16x128xf32>
      tpu.vector_store %arg13[%c0_26, %c0_27], %40 {strides = array<i32>} : memref<16x128xf32, #tpu.memory_space<vmem>>, vector<16x128xf32>,
    } else {
    }
    %c0 = arith.constant 0 : index
    %c0_4 = arith.constant 0 : index
    %8 = vector.load %arg12[%c0, %c0_4] : memref<16x128xf32, #tpu.memory_space<vmem>>, vector<16x128xf32>
    %9 = arith.truncf %8 : vector<16x128xf32> to vector<16x128xbf16>
    %c0_5 = arith.constant 0 : index
    %c0_6 = arith.constant 0 : index
    %c0_7 = arith.constant 0 : index
    %10 = vector.load %arg3[%c0_5, %c0_6, %c0_7] : memref<1x128x1024xbf16, #tpu.memory_space<vmem>>, vector<1x128x1024xbf16>
    %11 = vector.shape_cast %10 : vector<1x128x1024xbf16> to vector<128x1024xbf16>
    %cst = arith.constant dense<0.000000e+00> : vector<16x1024xf32>
    %12 = tpu.matmul %9, %11, %cst {dimension_numbers = #tpu.dot_dimension_numbers<[1], [0], [0], [1], [0, 0, 1, 1], [], []>} : vector<16x128xbf16>, vector<128x1024xbf16>, vector<16x1024xf32> -> vector<16x1024xf32>
    %c0_8 = arith.constant 0 : index
    %c0_9 = arith.constant 0 : index
    %c0_10 = arith.constant 0 : index
    %13 = vector.load %arg4[%c0_8, %c0_9, %c0_10] : memref<1x1x1024xf32, #tpu.memory_space<vmem>>, vector<1x1x1024xf32>
    %14 = vector.shape_cast %13 : vector<1x1x1024xf32> to vector<1x1024xf32>
    %15 = vector.broadcast %14 : vector<1x1024xf32> to vector<16x1024xf32>
    %16 = arith.addf %12, %15 : vector<16x1024xf32>
    %cst_11 = arith.constant 5.000000e-01 : f32
    %17 = vector.broadcast %cst_11 : f32 to vector<16x1024xf32>
    %18 = arith.mulf %17, %16 : vector<16x1024xf32>
    %cst_12 = arith.constant 0.707106769 : f32
    %19 = vector.broadcast %cst_12 : f32 to vector<16x1024xf32>
    %20 = arith.mulf %16, %19 : vector<16x1024xf32>
    %21 = math.erf %20 : vector<16x1024xf32>
    %cst_13 = arith.constant 1.000000e+00 : f32
    %22 = vector.broadcast %cst_13 : f32 to vector<16x1024xf32>
    %23 = arith.addf %22, %21 : vector<16x1024xf32>
    %24 = arith.mulf %18, %23 : vector<16x1024xf32>
    %c0_14 = arith.constant 0 : index
    %c0_15 = arith.constant 0 : index
    %25 = vector.load %arg13[%c0_14, %c0_15] : memref<16x128xf32, #tpu.memory_space<vmem>>, vector<16x128xf32>
    %26 = arith.truncf %24 : vector<16x1024xf32> to vector<16x1024xbf16>
    %c0_16 = arith.constant 0 : index
    %c0_17 = arith.constant 0 : index
    %c0_18 = arith.constant 0 : index
    %27 = vector.load %arg5[%c0_16, %c0_17, %c0_18] : memref<1x1024x128xbf16, #tpu.memory_space<vmem>>, vector<1x1024x128xbf16>
    %28 = vector.shape_cast %27 : vector<1x1024x128xbf16> to vector<1024x128xbf16>
    %cst_19 = arith.constant dense<0.000000e+00> : vector<16x128xf32>
    %29 = tpu.matmul %26, %28, %cst_19 {dimension_numbers = #tpu.dot_dimension_numbers<[1], [0], [0], [1], [0, 0, 1, 1], [], []>} : vector<16x1024xbf16>, vector<1024x128xbf16>, vector<16x128xf32> -> vector<16x128xf32>
    %30 = arith.addf %25, %29 : vector<16x128xf32>
    %c0_20 = arith.constant 0 : index
    %c0_21 = arith.constant 0 : index
    %31 = vector.load %arg13[%c0_20, %c0_21] : memref<16x128xf32, #tpu.memory_space<vmem>>, vector<16x128xf32>
    tpu.vector_store %arg13[%c0_20, %c0_21], %30 {strides = array<i32>} : memref<16x128xf32, #tpu.memory_space<vmem>>, vector<16x128xf32>,
    %c2_i32 = arith.constant 2 : i32
    %32 = arith.cmpi eq, %arg1, %c2_i32 : i32
    %33 = arith.extui %32 : i1 to i32
    %c0_i32_22 = arith.constant 0 : i32
    %34 = arith.cmpi ne, %33, %c0_i32_22 : i32
    scf.if %34 {
      %c0_25 = arith.constant 0 : index
      %c0_26 = arith.constant 0 : index
      %40 = vector.load %arg13[%c0_25, %c0_26] : memref<16x128xf32, #tpu.memory_space<vmem>>, vector<16x128xf32>
      %c0_27 = arith.constant 0 : index
      %c0_28 = arith.constant 0 : index
      %c0_29 = arith.constant 0 : index
      %41 = vector.load %arg6[%c0_27, %c0_28, %c0_29] : memref<1x1x128xf32, #tpu.memory_space<vmem>>, vector<1x1x128xf32>
      %42 = vector.shape_cast %41 : vector<1x1x128xf32> to vector<1x128xf32>
      %43 = vector.broadcast %42 : vector<1x128xf32> to vector<16x128xf32>
      %44 = arith.addf %40, %43 : vector<16x128xf32>
      %c0_30 = arith.constant 0 : index
      %c0_31 = arith.constant 0 : index
      %c0_32 = arith.constant 0 : index
      %45 = vector.load %arg7[%c0_30, %c0_31, %c0_32] : memref<1x1x128xf32, #tpu.memory_space<vmem>>, vector<1x1x128xf32>
      %46 = vector.shape_cast %45 : vector<1x1x128xf32> to vector<1x128xf32>
      %c0_33 = arith.constant 0 : index
      %c0_34 = arith.constant 0 : index
      %c0_35 = arith.constant 0 : index
      %47 = vector.load %arg8[%c0_33, %c0_34, %c0_35] : memref<1x1x128xf32, #tpu.memory_space<vmem>>, vector<1x1x128xf32>
      %48 = vector.shape_cast %47 : vector<1x1x128xf32> to vector<1x128xf32>
      %cst_36 = arith.constant dense<0.000000e+00> : vector<16xf32>
      %49 = vector.multi_reduction <add>, %44, %cst_36 [1] : vector<16x128xf32> to vector<16xf32>
      %50 = vector.shape_cast %49 : vector<16xf32> to vector<16x1xf32>
      %cst_37 = arith.constant 1.280000e+02 : f32
      %51 = vector.broadcast %cst_37 : f32 to vector<16x1xf32>
      %52 = arith.divf %50, %51 : vector<16x1xf32>
      %53 = vector.broadcast %52 : vector<16x1xf32> to vector<16x128xf32>
      %54 = arith.subf %44, %53 : vector<16x128xf32>
      %55 = arith.mulf %54, %54 : vector<16x128xf32>
      %cst_38 = arith.constant dense<0.000000e+00> : vector<16xf32>
      %56 = vector.multi_reduction <add>, %55, %cst_38 [1] : vector<16x128xf32> to vector<16xf32>
      %57 = vector.shape_cast %56 : vector<16xf32> to vector<16x1xf32>
      %cst_39 = arith.constant 1.280000e+02 : f32
      %58 = vector.broadcast %cst_39 : f32 to vector<16x1xf32>
      %59 = arith.divf %57, %58 : vector<16x1xf32>
      %cst_40 = arith.constant 9.99999974E-6 : f32
      %60 = vector.broadcast %cst_40 : f32 to vector<16x1xf32>
      %61 = arith.addf %59, %60 : vector<16x1xf32>
      %62 = math.rsqrt %61 : vector<16x1xf32>
      %63 = vector.broadcast %62 : vector<16x1xf32> to vector<16x128xf32>
      %64 = arith.mulf %54, %63 : vector<16x128xf32>
      %65 = vector.broadcast %46 : vector<1x128xf32> to vector<16x128xf32>
      %66 = arith.mulf %64, %65 : vector<16x128xf32>
      %67 = vector.broadcast %48 : vector<1x128xf32> to vector<16x128xf32>
      %68 = arith.addf %66, %67 : vector<16x128xf32>
      %c0_41 = arith.constant 0 : index
      %c0_42 = arith.constant 0 : index
      %69 = vector.load %arg12[%c0_41, %c0_42] : memref<16x128xf32, #tpu.memory_space<vmem>>, vector<16x128xf32>
      tpu.vector_store %arg12[%c0_41, %c0_42], %68 {strides = array<i32>} : memref<16x128xf32, #tpu.memory_space<vmem>>, vector<16x128xf32>,
    } else {
    }
    %c1_i32 = arith.constant 1 : i32
    %35 = arith.cmpi eq, %arg0, %c1_i32 : i32
    %c2_i32_23 = arith.constant 2 : i32
    %36 = arith.cmpi eq, %arg1, %c2_i32_23 : i32
    %37 = arith.andi %35, %36 : i1
    %38 = arith.extui %37 : i1 to i32
    %c0_i32_24 = arith.constant 0 : i32
    %39 = arith.cmpi ne, %38, %c0_i32_24 : i32
    scf.if %39 {
      %c0_25 = arith.constant 0 : index
      %c0_26 = arith.constant 0 : index
      %40 = vector.load %arg12[%c0_25, %c0_26] : memref<16x128xf32, #tpu.memory_space<vmem>>, vector<16x128xf32>
      %41 = arith.truncf %40 : vector<16x128xf32> to vector<16x128xbf16>
      %c0_27 = arith.constant 0 : index
      %c0_28 = arith.constant 0 : index
      %42 = vector.load %arg9[%c0_27, %c0_28] : memref<128x128xbf16, #tpu.memory_space<vmem>>, vector<128x128xbf16>
      %cst_29 = arith.constant dense<0.000000e+00> : vector<16x128xf32>
      %43 = tpu.matmul %41, %42, %cst_29 {dimension_numbers = #tpu.dot_dimension_numbers<[1], [0], [0], [1], [0, 0, 1, 1], [], []>} : vector<16x128xbf16>, vector<128x128xbf16>, vector<16x128xf32> -> vector<16x128xf32>
      %c0_30 = arith.constant 0 : index
      %c0_31 = arith.constant 0 : index
      %44 = vector.load %arg10[%c0_30, %c0_31] : memref<1x128xf32, #tpu.memory_space<vmem>>, vector<1x128xf32>
      %45 = vector.broadcast %44 : vector<1x128xf32> to vector<16x128xf32>
      %46 = arith.addf %43, %45 : vector<16x128xf32>
      %47 = math.tanh %46 : vector<16x128xf32>
      %c0_32 = arith.constant 0 : index
      %c0_33 = arith.constant 0 : index
      %48 = vector.load %arg11[%c0_32, %c0_33] : memref<16x128xf32, #tpu.memory_space<vmem>>, vector<16x128xf32>
      tpu.vector_store %arg11[%c0_32, %c0_33], %47 {strides = array<i32>} : memref<16x128xf32, #tpu.memory_space<vmem>>, vector<16x128xf32>,
    } else {
    }
    return
  }
  func.func @transform_0(%arg0: i32, %arg1: i32) -> (i32, i32) {
    %c0_i32 = arith.constant 0 : i32
    %c0_i32_0 = arith.constant 0 : i32
    %c0_i32_1 = arith.constant 0 : i32
    return %c0_i32, %c0_i32_0 : i32, i32
  }
  func.func @transform_1(%arg0: i32, %arg1: i32) -> (i32, i32, i32) {
    %c0_i32 = arith.constant 0 : i32
    %c0_i32_0 = arith.constant 0 : i32
    return %arg0, %c0_i32, %arg1 : i32, i32, i32
  }
  func.func @transform_2(%arg0: i32, %arg1: i32) -> (i32, i32, i32) {
    %c0_i32 = arith.constant 0 : i32
    %c0_i32_0 = arith.constant 0 : i32
    return %arg0, %c0_i32, %arg1 : i32, i32, i32
  }
  func.func @transform_3(%arg0: i32, %arg1: i32) -> (i32, i32, i32) {
    %c0_i32 = arith.constant 0 : i32
    %c0_i32_0 = arith.constant 0 : i32
    return %arg0, %arg1, %c0_i32 : i32, i32, i32
  }
  func.func @transform_4(%arg0: i32, %arg1: i32) -> (i32, i32, i32) {
    %c0_i32 = arith.constant 0 : i32
    %c0_i32_0 = arith.constant 0 : i32
    %c0_i32_1 = arith.constant 0 : i32
    return %arg0, %c0_i32, %c0_i32_0 : i32, i32, i32
  }
  func.func @transform_5(%arg0: i32, %arg1: i32) -> (i32, i32, i32) {
    %c0_i32 = arith.constant 0 : i32
    %c0_i32_0 = arith.constant 0 : i32
    %c0_i32_1 = arith.constant 0 : i32
    return %arg0, %c0_i32, %c0_i32_0 : i32, i32, i32
  }
  func.func @transform_6(%arg0: i32, %arg1: i32) -> (i32, i32, i32) {
    %c0_i32 = arith.constant 0 : i32
    %c0_i32_0 = arith.constant 0 : i32
    %c0_i32_1 = arith.constant 0 : i32
    return %arg0, %c0_i32, %c0_i32_0 : i32, i32, i32
  }
  func.func @transform_7(%arg0: i32, %arg1: i32) -> (i32, i32) {
    %c0_i32 = arith.constant 0 : i32
    %c0_i32_0 = arith.constant 0 : i32
    %c0_i32_1 = arith.constant 0 : i32
    return %c0_i32, %c0_i32_0 : i32, i32
  }
  func.func @transform_8(%arg0: i32, %arg1: i32) -> (i32, i32) {
    %c0_i32 = arith.constant 0 : i32
    %c0_i32_0 = arith.constant 0 : i32
    %c0_i32_1 = arith.constant 0 : i32
    return %c0_i32, %c0_i32_0 : i32, i32
  }
  func.func @transform_9(%arg0: i32, %arg1: i32) -> (i32, i32) {
    %c0_i32 = arith.constant 0 : i32
    %c0_i32_0 = arith.constant 0 : i32
    %c0_i32_1 = arith.constant 0 : i32
    return %c0_i32, %c0_i32_0 : i32, i32
  }
}

</mosaic_0001>

<bundles_post_ra>
// kernel: pd_encoder_forward.1
= control target key start
LH: loop header
LB: loop body
LE: loop exit
PB: predicated region body
PF: predicated region fallthrough
CT: control target
= control target key end

     0   :  { %s3897_s0 = inlined_call_operand.vmem [shape: f32[16,128], index: 0, kind: input, shape index: {}]   ;;  %s3898_s1 = inlined_call_operand.hbm [shape: bf16[2,128,3072], index: 1, kind: input, shape index: {}]   ;;  %s3899_s2 = inlined_call_operand.hbm [shape: f32[2,1,3072], index: 2, kind: input, shape index: {}]   ;;  %s3900_s3 = inlined_call_operand.hbm [shape: bf16[2,3072,128], index: 3, kind: input, shape index: {}]   ;;  %s3901_s4 = inlined_call_operand.hbm [shape: f32[2,1,128], index: 4, kind: input, shape index: {}]   ;;  %s3902_s5 = inlined_call_operand.hbm [shape: f32[2,1,128], index: 5, kind: input, shape index: {}]   ;;  %s3903_s6 = inlined_call_operand.hbm [shape: f32[2,1,128], index: 6, kind: input, shape index: {}]   ;;  %s3904_s7 = inlined_call_operand.hbm [shape: bf16[128,128], index: 7, kind: input, shape index: {}]   ;;  %s3905_s8 = inlined_call_operand.hbm [shape: f32[1,128], index: 8, kind: input, shape index: {}]   ;;  %s3906_s9 = inlined_call_operand.hbm [shape: f32[16,128], index: 9, kind: output, shape index: {}]  }
   0x1   :  { %3934 = sst [smem:[#allocation37_spill]] %s3897_s0 }
   0x2   :  { %3935 = sst [smem:[#allocation38_spill]] %s3901_s4 }
   0x3   :  { %3936 = sst [smem:[#allocation39_spill]] %s3902_s5 }
   0x4   :  { %3937 = sst [smem:[#allocation40_spill]] %s3903_s6 }
   0x5   :  { %3938 = sst [smem:[#allocation41_spill]] %s3904_s7 }
   0x6   :  { %3939 = sst [smem:[#allocation42_spill]] %s3905_s8 }
   0x7   :  { %3940 = sst [smem:[#allocation43_spill]] %s3906_s9 }
   0x8   :  { %14 = vsyncpa [#allocation5], 0 }
   0x9   :  { %16 = vsyncpa [#allocation5 + $0x1], 0 }
   0xa   :  { %17 = vsyncpa [#allocation8], 0 }
   0xb   :  { %19 = vsyncpa [#allocation8 + $0x1], 0 }
   0xc   :  { %20 = vsyncpa [#allocation11], 0 }
   0xd   :  { %22 = vsyncpa [#allocation11 + $0x1], 0 }
   0xe   :  { %23 = vsyncpa [#allocation14], 0 }
   0xf   :  { %25 = vsyncpa [#allocation14 + $0x1], 0 }
  0x10   :  { %26 = vsyncpa [#allocation17], 0 }
  0x11   :  { %27 = vsyncpa [#allocation6], 0  ;;  %s3325_s30 = smov 0   ;;  %s3327_s10 = smov 0  }
  0x12   :  { %s3329_s11 = smov 0   ;;  %s3331_s12 = smov 0  }
  0x13   :  { %s3333_s13 = smov 0   ;;  %s3335_s14 = smov 0  }
  0x14   :  { %s3337_s15 = smov 0   ;;  %s3339_s16 = smov 0  }
  0x15   :  { %s3341_s17 = smov 0   ;;  %s3343_s18 = smov 0  }
  0x16   :  { %s3345_s19 = smov 0  }
  0x17 LB: > { %3941 = sst [smem:[#allocation26_spill]] %s3229_s13  ;;  %s3381_s20 = sadd.s32 4294967295, %s3253_s19   ;;  %s3253_s19 = sphi %s3345_s19, %s33_s19   ;;  %s3249_s18 = sphi %s3343_s18, %s4008_s18   ;;  %s3245_s17 = sphi %s3341_s17, %s4007_s17   ;;  %s3241_s16 = sphi %s3339_s16, %s4006_s16   ;;  %s3237_s15 = sphi %s3337_s15, %s4005_s15   ;;  %s3233_s14 = sphi %s3335_s14, %s3999_s14   ;;  %s3229_s13 = sphi %s3333_s13, %s3998_s13   ;;  %s3225_s12 = sphi %s3331_s12, %s3997_s12   ;;  %s3221_s11 = sphi %s3329_s11, %s4004_s11   ;;  %s3217_s10 = sphi %s3327_s10, %s4003_s10   ;;  %s3213_s30 = sphi %s3325_s30, %s4002_s30  }
  0x18   : > { %3942 = sst [smem:[#allocation27_spill]] %s3233_s14  ;;  %p2336_p0 = scmp.ge.s32.totalorder %s3253_s19, 1 }
  0x19   : > { %3943 = sst [smem:[#allocation28_spill]] %s3237_s15  ;;  %p3925_p1 = scmp.eq.s32.totalorder %s3381_s20, 0 }
  0x1a   : > { %3944 = sst [smem:[#allocation29_spill]] %s3241_s16  ;;  %p296_p2 = scmp.lt.s32.totalorder %s3253_s19, 7 }
  0x1b   : > { %s3255_s22 = smov [#allocation15]  }
  0x1c   : > { %p3386_p3 = pnand %p2336_p0, %p296_p2  ;;  %s311_s23 = sshll.u32 %s3255_s22, 4  ;;  %s312_s23 = int_to_ptr.vmem [resolvable:$true] %s311_s23 }
  0x1d   : > { %s2906_s25 = scalar_lea.vmem %s312_s23, 1024  ;;  %p2914_p10 = scmp.lt.s32.totalorder %s312_s23, %s312_s23 }
  0x1e   : > { %s3945_s21 = scalar_select %p3386_p3, 1, 0 }
  0x1f   : > { %p2648_p4 = pneg %p3386_p3  ;;  %p2907_p7 = scmp.ne.s32.totalorder %s312_s23, %s2906_s25 }
  0x20   : > { %3946 = sst [smem:[#allocation30_spill]] %s3945_s21  ;;  %p2915_p11 = scmp.lt.s32.totalorder %s2906_s25, %s2906_s25 }
  0x21   : > { %p3394_p5 = pnand %p2648_p4, %p3925_p1 }
  0x22   : > { %p2916_p12 = por %p2915_p11, %p2914_p10 }
  0x23   : > { %s3947_s24 = scalar_select %p3394_p5, 1, 0 }
  0x24   : > { %p3923_p6 = pneg %p3394_p5 }
  0x25   : > { %3948 = sst [smem:[#allocation31_spill]] %s3947_s24 }
  0x26   : > { %p2909_p8 = pnand %p2907_p7, %p3923_p6 }
  0x28   : > { %p2910_p9 = pneg %p2909_p8 }
  0x2a   : > { %p2917_p13 = pnand %p2916_p12, %p2910_p9 }
  0x2c   : > { %2920 = shalt.err (!%p2917_p13)
}
  0x2d   : > { %s3908_s26 = smov 64   ;;  %s3909_s27 = smov 4  }
  0x2e   : > { %s3949_s7 = sld [smem:[#allocation41_spill]]  ;;  %s42_s22 = sadd.s32 1, %s3245_s17 }
  0x2f   : > { %p43_p0 = scmp.ge.s32.totalorder %s42_s22, 3  ;;  %s45_s25 = sadd.s32 1, %s3249_s18 }
  0x30   : > { %s75_s9 = sadd.s32 1, %s3233_s14  ;;  %p82_p2 = scmp.ne.s32.totalorder %s3233_s14, %s3229_s13 }
  0x31   : > { %s4010_s22 = smov (%p43_p0, %s42_s22), 0  ;;  %s4012_s25 = smov (!%p43_p0, %s45_s25), %s3249_s18 }
  0x32   : > { %3950 = sst [smem:[#allocation32_spill]] %s4010_s22  ;;  %s71_s0 = ssub.s32 %s3245_s17, %s4010_s22 }
  0x33   : > { %p83_p4 = scmp.eq.s32.totalorder %s3253_s19, 0  ;;  %p47_p7 = scmp.ge.s32.totalorder %s4012_s25, 2 }
  0x34   : > { %2651 = dma.hbm_to_vmem [thread:$0]  (!%p3394_p5), %s3949_s7, 1024, %s312_s23, [#allocation14], %s3908_s26, %s3908_s26, %s3909_s27  }
  0x35   : > { %p88_p8 = scmp.ne.s32.totalorder %s3229_s13, %s3225_s12  ;;  %p3426_p9 = por %p83_p4, %p82_p2 }
  0x36   : > { %p3924_p10 = scmp.lt.s32.totalorder %s3253_s19, 6  ;;  %s4014_s25 = smov (%p47_p7, %s4012_s25), 0 }
  0x37   : > { %3952 = sst [smem:[#allocation33_spill]] %s4014_s25  ;;  %p3435_p11 = por %p3925_p1, %p88_p8 }
  0x38   : > { %s3440_s29 = sand.u32 1, %s3233_s14   ;;  %s3444_s12 = ssub.s32 %s3249_s18, %s4014_s25 }
  0x39   : > { %s3953_s28 = scalar_select %p3435_p11, 1, 0 }
  0x3a   : > { %s72_s26 = sor.u32 %s71_s0, %s3444_s12  ;;  %p155_p12 = scmp.eq.s32.totalorder %s3444_s12, 0 }
  0x3b   : > { %3954 = sst [smem:[#allocation34_spill]] %s3953_s28  ;;  %p73_p13 = scmp.eq.s32.totalorder %s72_s26, 0 }
  0x3c   : > { %s3915_s27 = sshll.u32 %s3440_s29, 9  ;;  %s2341_s7 = sshll.u32 %s3245_s17, 3 }
  0x3d   : > { %s3451_s22 = scalar_select %p73_p13, %s3233_s14, %s75_s9  }
  0x3e   : > { %s3920_s15 = smul.u32 384, %s3249_s18  ;;  %s340_s16 = scalar_lea.vmem [#allocation4], %s3915_s27 }
  0x3f   : > { %3955 = sst [smem:[#allocation35_spill]] %s3451_s22  ;;  %s349_s28 = sshll.u32 %s340_s16, 4  ;;  %s3456_s28 = int_to_ptr.vmem [resolvable:$true] %s349_s28 }
  0x40   : > { %3956 = sst [smem:[#allocation36_spill]] %s3456_s28  ;;  %p3462_p0 = pnand %p3924_p10, %p3426_p9 }
  0x41   : > { %s346_s0 = sadd.s32 %s3920_s15, %s2341_s7  ;;  %s3469_s26 = sand.u32 1, %s3253_s19  }
  0x42   : > { %s3957_s25 = scalar_select %p3462_p0, 1, 0 }
  0x43   : > { %s2342_s9 = sshll.u32 %s346_s0, 6  ;;  %s2343_s14 = sshll.u32 %s3440_s29, 3 }
  0x44   : > { %s3474_s16 = scalar_lea.hbm %s3898_s1, %s2342_s9  ;;  %s2622_s23 = smul.u32 24, %s3249_s18 }
  0x45   : > { %s363_s21 = scalar_lea.vmem [#allocation7], %s2343_s14  ;;  %s2347_s24 = sshll.u32 %s3245_s17, 7 }
  0x46   : > { %s369_s13 = sadd.s32 %s2622_s23, %s2341_s7  ;;  %s373_s6 = sshll.u32 %s363_s21, 4  ;;  %s374_s6 = int_to_ptr.vmem [resolvable:$true] %s373_s6 }
  0x47   : > { %s2345_s5 = sshll.u32 %s369_s13, 4  ;;  %s360_s4 = scalar_lea.sflag [#allocation8], %s3469_s26 }
  0x48   : > { %s371_s15 = scalar_lea.hbm %s3899_s2, %s2345_s5  ;;  %p3926_p2 = pneg %p3462_p0 }
  0x49   : > { %s2934_s0 = scalar_lea.vmem %s374_s6, 128  ;;  %s3258_s27 = smov [#allocation7]  }
  0x4a   : > { %p2935_p7 = scmp.ne.s32.totalorder %s374_s6, %s2934_s0  ;;  %s2939_s7 = sshll.u32 %s3258_s27, 4  ;;  %s2940_s7 = int_to_ptr.vmem [resolvable:$false] %s2939_s7 }
  0x4b   : > { %s2941_s14 = scalar_lea.vmem %s2940_s7, 256  ;;  %p2942_p13 = scmp.lt.s32.totalorder %s374_s6, %s2940_s7 }
  0x4c   : > { %p2937_p8 = pnand %p2935_p7, %p3926_p2  ;;  %p2943_p6 = scmp.lt.s32.totalorder %s2941_s14, %s2934_s0 }
  0x4e   : > { %p2938_p9 = pneg %p2937_p8  ;;  %p2944_p10 = por %p2943_p6, %p2942_p13 }
  0x50   : > { %p2945_p1 = pnand %p2944_p10, %p2938_p9 }
  0x52   : > { %2948 = shalt.err (!%p2945_p1)
}
  0x53   : > { %2661 = dma.hbm_to_vmem [thread:$0]  (!%p3462_p0), %s371_s15, 128, %s374_s6, %s360_s4  }
  0x54   : > { %s3958_s5 = smul.u32 384, %s3249_s18  ;;  %s3959_s13 = sshll.u32 %s3440_s29, 9 }
  0x55   : > { %s384_s21 = scalar_lea.vmem [#allocation9], %s3959_s13  ;;  %s157_s27 = sadd.s32 1, %s3221_s11 }
  0x56   : > { %s390_s8 = sadd.s32 %s3958_s5, %s2347_s24  ;;  %s393_s22 = sshll.u32 %s384_s21, 4  ;;  %s3496_s22 = int_to_ptr.vmem [resolvable:$true] %s393_s22 }
  0x57   : > { %s2348_s28 = sshll.u32 %s390_s8, 6  ;;  %p164_p1 = scmp.ne.s32.totalorder %s3221_s11, %s3217_s10 }
  0x58   : > { %s3501_s0 = scalar_lea.hbm %s3900_s3, %s2348_s28  ;;  %p170_p6 = scmp.ne.s32.totalorder %s3217_s10, %s3213_s30 }
  0x59   : > { %s3507_s7 = scalar_select %p155_p12, %s3221_s11, %s157_s27  }
  0x5a   : > { %s3514_s6 = sand.u32 1, %s3221_s11   ;;  %p166_p10 = por %p164_p1, %p83_p4 }
  0x5b   : > { %p3960_p7 = scmp.eq.s32.totalorder %s3381_s20, 0  ;;  %s3525_s24 = sshll.u32 %s3249_s18, 4 }
  0x5c   : > { %s3962_s12 = sld [smem:[#allocation38_spill]]  ;;  %s406_s13 = scalar_lea.vmem [#allocation10], %s3514_s6 }
  0x5d   : > { %p3520_p8 = por %p170_p6, %p3960_p7  ;;  %s413_s21 = sshll.u32 %s406_s13, 4  ;;  %s414_s21 = int_to_ptr.vmem [resolvable:$true] %s413_s21 }
  0x5e   : > { %p3963_p12 = scmp.lt.s32.totalorder %s3253_s19, 6  ;;  %s3259_s28 = smov [#allocation16]  }
  0x5f   : > { %s3961_s15 = scalar_select %p3520_p8, 1, 0 }
  0x60   : > { %p3534_p9 = pnand %p3963_p12, %p166_p10  ;;  %s325_s9 = sshll.u32 %s3259_s28, 4  ;;  %s326_s9 = int_to_ptr.vmem [resolvable:$true] %s325_s9 }
  0x61   : > { %s3933_s23 = scalar_lea.sflag [#allocation11], %s3469_s26  ;;  %s2962_s27 = scalar_lea.vmem %s414_s21, 16 }
  0x62   : > { %s411_s8 = scalar_lea.hbm %s3962_s12, %s3525_s24  ;;  %p3928_p4 = pneg %p3534_p9 }
  0x63   : > { %p2963_p13 = scmp.ne.s32.totalorder %s414_s21, %s2962_s27  ;;  %s3260_s14 = smov [#allocation10]  }
  0x64   : > { %s2967_s5 = sshll.u32 %s3260_s14, 4  ;;  %s2968_s5 = int_to_ptr.vmem [resolvable:$false] %s2967_s5 }
  0x65   : > { %p2965_p1 = pnand %p2963_p13, %p3928_p4  ;;  %s2969_s12 = scalar_lea.vmem %s2968_s5, 32 }
  0x66   : > { %p2970_p10 = scmp.lt.s32.totalorder %s414_s21, %s2968_s5  ;;  %p2971_p7 = scmp.lt.s32.totalorder %s2969_s12, %s2962_s27 }
  0x67   : > { %p2966_p6 = pneg %p2965_p1 }
  0x68   : > { %p2972_p12 = por %p2971_p7, %p2970_p10 }
  0x6a   : > { %p2973_p2 = pnand %p2972_p12, %p2966_p6 }
  0x6c   : > { %2976 = shalt.err (!%p2973_p2)
}
  0x6d   : > { %2667 = dma.hbm_to_vmem [thread:$0]  (!%p3534_p9), %s411_s8, 16, %s414_s21, %s3933_s23  }
  0x6e   : > { %s2988_s28 = scalar_lea.vmem %s326_s9, 16  ;;  %p3966_p13 = pneg %p3394_p5 }
  0x6f   : > { %p2989_p8 = scmp.ne.s32.totalorder %s326_s9, %s2988_s28  ;;  %s2995_s14 = scalar_lea.vmem %s326_s9, 32 }
  0x70   : > { %p2996_p11 = scmp.lt.s32.totalorder %s326_s9, %s326_s9  ;;  %p2997_p3 = scmp.lt.s32.totalorder %s2995_s14, %s2988_s28 }
  0x71   : > { %p2991_p1 = pnand %p2989_p8, %p3966_p13 }
  0x72   : > { %p2998_p0 = por %p2997_p3, %p2996_p11 }
  0x73   : > { %p2992_p4 = pneg %p2991_p1 }
  0x75   : > { %p2999_p10 = pnand %p2998_p0, %p2992_p4 }
  0x77   : > { %3002 = shalt.err (!%p2999_p10)
}
  0x78   : > { %s3967_s12 = sld [smem:[#allocation42_spill]]  ;;  %s337_s21 = scalar_lea.sflag [#allocation5], %s3440_s29 }
  0x79   : > { %s3968_s8 = sld [smem:[#allocation36_spill]]  ;;  %p3969_p8 = scmp.ne.s32.totalorder %s3957_s25, 0 }
  0x7a   : > { %s3261_s28 = smov [#allocation4]  }
  0x7b   : > { %p3970_p6 = pneg %p3969_p8  ;;  %s3021_s14 = sshll.u32 %s3261_s28, 4  ;;  %s3022_s14 = int_to_ptr.vmem [resolvable:$false] %s3021_s14 }
  0x7c   : > { %s3023_s13 = scalar_lea.vmem %s3022_s14, 16384 }
  0x7e   : > { %2654 = dma.hbm_to_vmem [thread:$0]  (!%p3394_p5), %s3967_s12, 16, %s326_s9, [#allocation17]  }
  0x7f   : > { %s3016_s23 = scalar_lea.vmem %s3968_s8, 8192  ;;  %p3024_p11 = scmp.lt.s32.totalorder %s3968_s8, %s3022_s14 }
  0x80   : > { %p3017_p2 = scmp.ne.s32.totalorder %s3968_s8, %s3016_s23  ;;  %p3025_p0 = scmp.lt.s32.totalorder %s3023_s13, %s3016_s23 }
  0x82   : > { %p3019_p7 = pnand %p3017_p2, %p3970_p6  ;;  %p3026_p4 = por %p3025_p0, %p3024_p11 }
  0x84   : > { %p3020_p3 = pneg %p3019_p7 }
  0x86   : > { %p3027_p12 = pnand %p3026_p4, %p3020_p3 }
  0x88   : > { %3030 = shalt.err (!%p3027_p12)
}
  0x89   : > { %s3262_s27 = smov 1536   ;;  %s3263_s29 = smov 512  }
  0x8a   : > { %s3264_s9 = smov 32   ;;  %s3044_s5 = scalar_lea.vmem %s3496_s22, 8192 }
  0x8b   : > { %2658 = dma.hbm_to_vmem [thread:$0]  (!%p3969_p8), %s3474_s16, 8192, %s3968_s8, %s337_s21, %s3262_s27, %s3263_s29, %s3264_s9  }
  0x8c   : > { %p3045_p5 = scmp.ne.s32.totalorder %s3496_s22, %s3044_s5  ;;  %p3971_p13 = pmov %p3970_p6 }
  0x8d   : > { %s3265_s23 = smov [#allocation9]  }
  0x8e   : > { %p3047_p1 = pnand %p3045_p5, %p3971_p13  ;;  %s3049_s12 = sshll.u32 %s3265_s23, 4  ;;  %s3050_s12 = int_to_ptr.vmem [resolvable:$false] %s3049_s12 }
  0x8f   : > { %s3051_s28 = scalar_lea.vmem %s3050_s12, 16384  ;;  %p3052_p2 = scmp.lt.s32.totalorder %s3496_s22, %s3050_s12 }
  0x90   : > { %p3048_p10 = pneg %p3047_p1  ;;  %p3053_p6 = scmp.lt.s32.totalorder %s3051_s28, %s3044_s5 }
  0x92   : > { %p3054_p7 = por %p3053_p6, %p3052_p2 }
  0x94   : > { %p3055_p3 = pnand %p3054_p7, %p3048_p10 }
  0x96   : > { %3058 = shalt.err (!%p3055_p3)
}
  0x97   : > { %s3972_s14 = smov 4   ;;  %s3973_s13 = smov 64  }
  0x98   : > { %2664 = dma.hbm_to_vmem [thread:$0]  (!%p3969_p8), %s3501_s0, 8192, %s3496_s22, %s360_s4, %s3973_s13, %s3973_s13, %s3972_s14  }
  0x99   : > { %s3974_s21 = sld [smem:[#allocation39_spill]]  ;;  %s423_s29 = scalar_lea.vmem [#allocation12], %s3514_s6 }
  0x9a   : > { %s430_s9 = sshll.u32 %s423_s29, 4  ;;  %p3975_p0 = pneg %p3534_p9  ;;  %s431_s9 = int_to_ptr.vmem [resolvable:$true] %s430_s9 }
  0x9b   : > { %s3072_s5 = scalar_lea.vmem %s431_s9, 16  ;;  %s3266_s25 = smov [#allocation12]  }
  0x9c   : > { %p3073_p11 = scmp.ne.s32.totalorder %s431_s9, %s3072_s5  ;;  %s3077_s23 = sshll.u32 %s3266_s25, 4  ;;  %s3078_s23 = int_to_ptr.vmem [resolvable:$false] %s3077_s23 }
  0x9d   : > { %s3079_s12 = scalar_lea.vmem %s3078_s23, 32  ;;  %p3080_p5 = scmp.lt.s32.totalorder %s431_s9, %s3078_s23 }
  0x9e   : > { %p3075_p4 = pnand %p3073_p11, %p3975_p0  ;;  %p3081_p13 = scmp.lt.s32.totalorder %s3079_s12, %s3072_s5 }
  0x9f   : > { %s428_s27 = scalar_lea.hbm %s3974_s21, %s3525_s24 }
  0xa0   : > { %p3076_p12 = pneg %p3075_p4  ;;  %p3082_p8 = por %p3081_p13, %p3080_p5 }
  0xa2   : > { %p3083_p1 = pnand %p3082_p8, %p3076_p12 }
  0xa4   : > { %3086 = shalt.err (!%p3083_p1)
}
  0xa5   : > { %s3976_s4 = scalar_lea.sflag [#allocation11], %s3469_s26  ;;  %s3977_s28 = sld [smem:[#allocation40_spill]] }
  0xa6   : > { %2670 = dma.hbm_to_vmem [thread:$0]  (!%p3534_p9), %s428_s27, 16, %s431_s9, %s3976_s4  }
  0xa7   : > { %s440_s13 = scalar_lea.vmem [#allocation13], %s3514_s6  ;;  %s438_s8 = scalar_lea.sflag [#allocation14], %s3469_s26 }
  0xa8   : > { %s447_s16 = sshll.u32 %s440_s13, 4  ;;  %p3978_p2 = pmov %p3975_p0  ;;  %s448_s16 = int_to_ptr.vmem [resolvable:$true] %s447_s16 }
  0xa9   : > { %s3100_s21 = scalar_lea.vmem %s448_s16, 16  ;;  %s3267_s29 = smov [#allocation13]  }
  0xaa   : > { %p3101_p10 = scmp.ne.s32.totalorder %s448_s16, %s3100_s21  ;;  %s3105_s5 = sshll.u32 %s3267_s29, 4  ;;  %s3106_s5 = int_to_ptr.vmem [resolvable:$false] %s3105_s5 }
  0xab   : > { %s445_s14 = scalar_lea.hbm %s3977_s28, %s3525_s24  ;;  %s3107_s25 = scalar_lea.vmem %s3106_s5, 32 }
  0xac   : > { %p3103_p6 = pnand %p3101_p10, %p3978_p2  ;;  %p3108_p3 = scmp.lt.s32.totalorder %s448_s16, %s3106_s5 }
  0xad   : > { %p3109_p11 = scmp.lt.s32.totalorder %s3107_s25, %s3100_s21 }
  0xae   : > { %p3104_p7 = pneg %p3103_p6 }
  0xaf   : > { %p3110_p0 = por %p3109_p11, %p3108_p3 }
  0xb1   : > { %p3111_p4 = pnand %p3110_p0, %p3104_p7 }
  0xb3   : > { %3114 = shalt.err (!%p3111_p4)
}
  0xb4   : > { %2673 = dma.hbm_to_vmem [thread:$0]  (!%p3534_p9), %s445_s14, 16, %s448_s16, %s438_s8  }
  0xb5   : > { %s3979_s6 = sld [smem:[#allocation30_spill]] }
  0xbb   : > { %p3980_p12 = scmp.ne.s32.totalorder %s3979_s6, 0 }
  0xbc   : > { %s3981_s26 = sld [smem:[#allocation26_spill]] (!%p3980_p12) }
  0xbd   : > { %456 = sbr.rel (%p3980_p12) target bundleno = 1350 (0x546), region = 56  ;;  %s3982_s24 = sld [smem:[#allocation34_spill]] (!%p3980_p12) }
  0xc2   : > { %s458_s27 = sand.u32 1, %s3981_s26  }
  0xc3   : > { %s2353_s9 = sshll.u32 %s458_s27, 9  ;;  %s459_s23 = scalar_lea.sflag [#allocation5], %s458_s27 }
  0xc4   : > { %s3608_s12 = scalar_lea.vmem [#allocation4], %s2353_s9  ;;  %p3983_p5 = scmp.ne.s32.totalorder %s3982_s24, 0 }
  0xc6   : > { %3184 = dma.done.wait (%p3983_p5), %s459_s23, 8192  }
  0xc7   : > { %3186 = vsyncadd (%p3983_p5), %s459_s23, 4294959104  ;;  %s467_s4 = sand.u32 1, %s3381_s20   ;;  %s2354_s30 = sshll.u32 %s458_s27, 3 }
  0xc8   : > { %s468_s22 = scalar_lea.sflag [#allocation8], %s467_s4  ;;  %s3615_s0 = scalar_lea.vmem [#allocation7], %s2354_s30 }
  0xc9   : > { %3188 = dma.done.wait (%p3983_p5), %s468_s22, 8320  }
  0xca   : > { %3190 = vsyncadd (%p3983_p5), %s468_s22, 4294958976  ;;  %s3622_s28 = sand.u32 1, %s3217_s10   ;;  %s3624_s14 = scalar_lea.vmem [#allocation9], %s2353_s9 }
  0xcb   : > { %s486_s13 = scalar_lea.sflag [#allocation11], %s467_s4  ;;  %s488_s16 = scalar_lea.vmem [#allocation10], %s3622_s28 }
  0xcc   : > { %p3984_p9 = scmp.ne.s32.totalorder %s3961_s15, 0 }
  0xce   : > { %3192 = dma.done.wait (%p3984_p9), %s486_s13, 32  }
  0xcf   : > { %3194 = vsyncadd (%p3984_p9), %s486_s13, 4294967264  ;;  %s496_s8 = scalar_lea.vmem [#allocation12], %s3622_s28  ;;  %s502_s21 = scalar_lea.sflag [#allocation14], %s467_s4 }
  0xd0   : > { %s504_s29 = scalar_lea.vmem [#allocation13], %s3622_s28 }
  0xd1   : > { %3196 = dma.done.wait (%p3984_p9), %s502_s21, 16  }
  0xd2   : > { %3198 = vsyncadd (%p3984_p9), %s502_s21, 4294967280  ;;  %p3985_p13 = scmp.eq.s32.totalorder %s3381_s20, 0 }
  0xd4   : > { %3200 = dma.done.wait (%p3985_p13), [#allocation14], 1024   ;;  %p3986_p8 = pmov %p3985_p13 }
  0xd6   : > { %3202 = vsyncadd (%p3986_p8), [#allocation14], 4294966272  ;;  %p3987_p1 = pmov %p3986_p8 }
  0xd8   : > { %3204 = dma.done.wait (%p3987_p1), [#allocation17], 16   ;;  %p3988_p10 = pmov %p3987_p1 }
  0xd9   : > { %s3989_s5 = sld [smem:[#allocation29_spill]] }
  0xda   : > { %3206 = vsyncadd (%p3988_p10), [#allocation17], 4294967280  ;;  %s3990_s25 = sld [smem:[#allocation28_spill]] }
  0xdf   : > { %p568_p2 = scmp.eq.s32.totalorder %s3989_s5, 0 }
  0xe0   : > { %p569_p6 = scmp.eq.s32.totalorder %s3990_s25, 0 }
  0xe2   : > { %p570_p7 = pnand %p569_p6, %p568_p2 }
  0xe3   : > { %s3991_s26 = sld [smem:[#allocation37_spill]] (!%p570_p7) }
  0xe4   : > { %573 = sbr.rel (%p570_p7) target bundleno = 235 (0xeb), region = 92 }
  0xe9   : > { %v574_v0 = vld [vmem:[%s3991_s26] sm:$0xff]  ;;  %v575_v1 = vld [vmem:[%s3991_s26 + $0x8] sm:$0xff] }
  0xea   : > { %576 = vst [vmem:[#allocation2] sm:$0xff] %v574_v0  ;;  %577 = vst [vmem:[#allocation2 + $0x8] sm:$0xff] %v575_v1 }
  0xeb PF: > { %s3992_s9 = sld [smem:[#allocation28_spill]] }
  0xf1   : > { %p2358_p3 = scmp.ne.s32.totalorder %s3992_s9, 0 }
  0xf3   : > { %580 = sbr.rel (%p2358_p3) target bundleno = 250 (0xfa), region = 96 }
  0xf8   : > { %v3268_v2 = vmov 0.0  }
  0xf9   : > { %581 = vst [vmem:[#allocation3 + $0x8] sm:$0xff] %v3268_v2  ;;  %582 = vst [vmem:[#allocation3] sm:$0xff] %v3268_v2 }
  0xfa PF: > { %v642_v3 = vld [vmem:[%s3608_s12 + $0x1c0] sm:$0xff]  ;;  %v643_v5 = vld [vmem:[%s3608_s12 + $0x1c8] sm:$0xff]  ;;  %v3269_v11 = vmov 0   ;;  %v644_v63 = vld [vmem:[%s3608_s12 + $0x1d0] sm:$0xff]  ;;  %s3993_s23 = sld [smem:[#allocation28_spill]] }
  0xfb   : > { %v646_v4 = vld [vmem:[%s3608_s12 + $0x1e0] sm:$0xff]  ;;  %v647_v7 = vld [vmem:[%s3608_s12 + $0x1e8] sm:$0xff]  ;;  %1044 = vmatprep.mubr.bf16.mxu0 %v3269_v11  ;;  %1087 = vmatprep.mubr.bf16.mxu1 %v3269_v11  ;;  %v648_v0 = vld [vmem:[%s3608_s12 + $0x1f0] sm:$0xff] }
  0xfc   : > { %v2416_v6 = vcombine.high %v642_v3, %v646_v4  ;;  %v2415_v8 = vcombine.low %v642_v3, %v646_v4  ;;  %v634_v9 = vld [vmem:[%s3608_s12 + $0x180] sm:$0xff]  ;;  %v2418_v12 = vcombine.high %v643_v5, %v647_v7  ;;  %v2417_v13 = vcombine.low %v643_v5, %v647_v7  ;;  %v635_v15 = vld [vmem:[%s3608_s12 + $0x188] sm:$0xff]  ;;  %v645_v3 = vld [vmem:[%s3608_s12 + $0x1d8] sm:$0xff] }
  0xfd   : > { %v638_v10 = vld [vmem:[%s3608_s12 + $0x1a0] sm:$0xff]  ;;  %v639_v16 = vld [vmem:[%s3608_s12 + $0x1a8] sm:$0xff]  ;;  %v649_v4 = vld [vmem:[%s3608_s12 + $0x1f8] sm:$0xff] }
  0xfe   : > { %v2408_v14 = vcombine.high %v634_v9, %v638_v10  ;;  %v626_v17 = vld [vmem:[%s3608_s12 + $0x140] sm:$0xff]  ;;  %1012 = vmatprep.subr.bf16.mxu0 %v2416_v6  ;;  %v2410_v18 = vcombine.high %v635_v15, %v639_v16  ;;  %v627_v20 = vld [vmem:[%s3608_s12 + $0x148] sm:$0xff]  ;;  %1055 = vmatprep.subr.bf16.mxu1 %v2418_v12  ;;  %v2407_v22 = vcombine.low %v634_v9, %v638_v10  ;;  %v636_v9 = vld [vmem:[%s3608_s12 + $0x190] sm:$0xff] }
  0xff   : > { %v630_v19 = vld [vmem:[%s3608_s12 + $0x160] sm:$0xff]  ;;  %v631_v21 = vld [vmem:[%s3608_s12 + $0x168] sm:$0xff]  ;;  %1013 = vmatpush1.bf16.msra.mxu0 %v2415_v8  ;;  %1056 = vmatpush1.bf16.msra.mxu1 %v2417_v13  ;;  %v2409_v23 = vcombine.low %v635_v15, %v639_v16  ;;  %v640_v10 = vld [vmem:[%s3608_s12 + $0x1b0] sm:$0xff]  ;;  %v2420_v13 = vcombine.high %v644_v63, %v648_v0  ;;  %v2422_v16 = vcombine.high %v645_v3, %v649_v4 }
 0x100   : > { %1014 = vmatprep.subr.bf16.mxu0 %v2408_v14  ;;  %v2400_v24 = vcombine.high %v626_v17, %v630_v19  ;;  %1057 = vmatprep.subr.bf16.mxu1 %v2410_v18  ;;  %v2402_v25 = vcombine.high %v627_v20, %v631_v21  ;;  %v618_v26 = vld [vmem:[%s3608_s12 + $0x100] sm:$0xff]  ;;  %v619_v28 = vld [vmem:[%s3608_s12 + $0x108] sm:$0xff]  ;;  %v2399_v30 = vcombine.low %v626_v17, %v630_v19  ;;  %v637_v14 = vld [vmem:[%s3608_s12 + $0x198] sm:$0xff]  ;;  %p1954_p11 = scmp.eq.s32.totalorder %s3993_s23, 2  ;;  %p2487_p0 = scmp.ne.s32.totalorder %s3993_s23, 2 }
 0x101   : > { %v622_v27 = vld [vmem:[%s3608_s12 + $0x120] sm:$0xff]  ;;  %v623_v29 = vld [vmem:[%s3608_s12 + $0x128] sm:$0xff]  ;;  %v2401_v31 = vcombine.low %v627_v20, %v631_v21  ;;  %v641_v15 = vld [vmem:[%s3608_s12 + $0x1b8] sm:$0xff]  ;;  %v2419_v18 = vcombine.low %v644_v63, %v648_v0  ;;  %v2421_v21 = vcombine.low %v645_v3, %v649_v4 }
 0x102   : > { %v2392_v32 = vcombine.high %v618_v26, %v622_v27  ;;  %v2394_v33 = vcombine.high %v619_v28, %v623_v29  ;;  %v610_v34 = vld [vmem:[%s3608_s12 + $0xc0] sm:$0xff]  ;;  %v611_v36 = vld [vmem:[%s3608_s12 + $0xc8] sm:$0xff]  ;;  %v2391_v38 = vcombine.low %v618_v26, %v622_v27  ;;  %v2393_v39 = vcombine.low %v619_v28, %v623_v29  ;;  %v628_v19 = vld [vmem:[%s3608_s12 + $0x150] sm:$0xff] }
 0x103   : > { %1015 = vmatpush1.bf16.msra.mxu0 %v2407_v22  ;;  %1058 = vmatpush1.bf16.msra.mxu1 %v2409_v23  ;;  %v614_v35 = vld [vmem:[%s3608_s12 + $0xe0] sm:$0xff]  ;;  %v615_v37 = vld [vmem:[%s3608_s12 + $0xe8] sm:$0xff]  ;;  %v632_v20 = vld [vmem:[%s3608_s12 + $0x170] sm:$0xff]  ;;  %v2412_v22 = vcombine.high %v636_v9, %v640_v10  ;;  %v2411_v26 = vcombine.low %v636_v9, %v640_v10  ;;  %v2413_v29 = vcombine.low %v637_v14, %v641_v15 }
 0x104   : > { %1016 = vmatprep.subr.bf16.mxu0 %v2400_v24  ;;  %1059 = vmatprep.subr.bf16.mxu1 %v2402_v25  ;;  %v2384_v40 = vcombine.high %v610_v34, %v614_v35  ;;  %v2386_v41 = vcombine.high %v611_v36, %v615_v37  ;;  %v602_v42 = vld [vmem:[%s3608_s12 + $0x80] sm:$0xff]  ;;  %v603_v44 = vld [vmem:[%s3608_s12 + $0x88] sm:$0xff]  ;;  %v2383_v46 = vcombine.low %v610_v34, %v614_v35  ;;  %v629_v23 = vld [vmem:[%s3608_s12 + $0x158] sm:$0xff] }
 0x105   : > { %v606_v43 = vld [vmem:[%s3608_s12 + $0xa0] sm:$0xff]  ;;  %v607_v45 = vld [vmem:[%s3608_s12 + $0xa8] sm:$0xff]  ;;  %v2385_v47 = vcombine.low %v611_v36, %v615_v37  ;;  %v633_v24 = vld [vmem:[%s3608_s12 + $0x178] sm:$0xff]  ;;  %v2414_v25 = vcombine.high %v637_v14, %v641_v15  ;;  %v2403_v34 = vcombine.low %v628_v19, %v632_v20 }
 0x106   : > { %v2376_v48 = vcombine.high %v602_v42, %v606_v43  ;;  %v2378_v49 = vcombine.high %v603_v44, %v607_v45  ;;  %v594_v50 = vld [vmem:[%s3608_s12 + $0x40] sm:$0xff]  ;;  %v595_v52 = vld [vmem:[%s3608_s12 + $0x48] sm:$0xff]  ;;  %v2375_v54 = vcombine.low %v602_v42, %v606_v43  ;;  %v2377_v55 = vcombine.low %v603_v44, %v607_v45  ;;  %v620_v27 = vld [vmem:[%s3608_s12 + $0x110] sm:$0xff] }
 0x107   : > { %1017 = vmatpush1.bf16.msra.mxu0 %v2399_v30  ;;  %1060 = vmatpush1.bf16.msra.mxu1 %v2401_v31  ;;  %v598_v51 = vld [vmem:[%s3608_s12 + $0x60] sm:$0xff]  ;;  %v599_v53 = vld [vmem:[%s3608_s12 + $0x68] sm:$0xff]  ;;  %v624_v28 = vld [vmem:[%s3608_s12 + $0x130] sm:$0xff]  ;;  %v2404_v30 = vcombine.high %v628_v19, %v632_v20  ;;  %v2405_v37 = vcombine.low %v629_v23, %v633_v24 }
 0x108   : > { %1018 = vmatprep.subr.bf16.mxu0 %v2392_v32  ;;  %1061 = vmatprep.subr.bf16.mxu1 %v2394_v33  ;;  %v2368_v56 = vcombine.high %v594_v50, %v598_v51  ;;  %v586_v57 = vld [vmem:[%s3608_s12] sm:$0xff]  ;;  %v587_v59 = vld [vmem:[%s3608_s12 + $0x8] sm:$0xff]  ;;  %v2370_v60 = vcombine.high %v595_v52, %v599_v53  ;;  %v2367_v62 = vcombine.low %v594_v50, %v598_v51  ;;  %v621_v31 = vld [vmem:[%s3608_s12 + $0x118] sm:$0xff] }
 0x109   : > { %v590_v58 = vld [vmem:[%s3608_s12 + $0x20] sm:$0xff]  ;;  %v591_v61 = vld [vmem:[%s3608_s12 + $0x28] sm:$0xff]  ;;  %v2369_v1 = vcombine.low %v595_v52, %v599_v53  ;;  %v625_v32 = vld [vmem:[%s3608_s12 + $0x138] sm:$0xff]  ;;  %v2406_v33 = vcombine.high %v629_v23, %v633_v24  ;;  %v2395_v42 = vcombine.low %v620_v27, %v624_v28 }
 0x10a   : > { %v2360_v2 = vcombine.high %v586_v57, %v590_v58  ;;  %v2362_v5 = vcombine.high %v587_v59, %v591_v61  ;;  %v583_v6 = vld [vmem:[#allocation2] sm:$0xff]  ;;  %v584_v7 = vld [vmem:[#allocation2 + $0x8] sm:$0xff]  ;;  %v2359_v8 = vcombine.low %v586_v57, %v590_v58  ;;  %v2361_v12 = vcombine.low %v587_v59, %v591_v61  ;;  %v612_v35 = vld [vmem:[%s3608_s12 + $0xd0] sm:$0xff] }
 0x10b   : > { %1019 = vmatpush1.bf16.msra.mxu0 %v2391_v38  ;;  %1062 = vmatpush1.bf16.msra.mxu1 %v2393_v39  ;;  %v3696_v17 = vpack.c.bf16 %v584_v7, %v583_v6  ;;  %v616_v36 = vld [vmem:[%s3608_s12 + $0xf0] sm:$0xff]  ;;  %v2396_v38 = vcombine.high %v620_v27, %v624_v28  ;;  %v613_v39 = vld [vmem:[%s3608_s12 + $0xd8] sm:$0xff]  ;;  %v2397_v44 = vcombine.low %v621_v31, %v625_v32  ;;  %v2783_v7 = vld [vmem:[%s3624_s14 + $0x78] sm:$0xff]  }
 0x10c   : > { %1020 = vmatprep.subr.bf16.mxu0 %v2384_v40  ;;  %1063 = vmatprep.subr.bf16.mxu1 %v2386_v41  ;;  %v617_v40 = vld [vmem:[%s3608_s12 + $0xf8] sm:$0xff]  ;;  %v2398_v41 = vcombine.high %v621_v31, %v625_v32  ;;  %v608_v43 = vld [vmem:[%s3608_s12 + $0xb0] sm:$0xff]  ;;  %v2388_v45 = vcombine.high %v612_v35, %v616_v36  ;;  %v2785_v9 = vld [vmem:[%s3624_s14 + $0x38] sm:$0xff]  }
 0x10d   : > { %v596_v50 = vld [vmem:[%s3608_s12 + $0x50] sm:$0xff]  ;;  %v2389_v52 = vcombine.low %v613_v39, %v617_v40  ;;  %v593_v63 = vld [vmem:[%s3608_s12 + $0x38] sm:$0xff]  ;;  %v2786_v10 = vld [vmem:[%s3624_s14 + $0xb8] sm:$0xff]  }
 0x10e   : > { %v600_v51 = vld [vmem:[%s3608_s12 + $0x70] sm:$0xff]  ;;  %v2789_v14 = vld [vmem:[%s3624_s14 + $0x30] sm:$0xff]   ;;  %v2794_v19 = vld [vmem:[%s3624_s14 + $0xa8] sm:$0xff]  }
 0x10f   : > { %1021 = vmatpush1.bf16.msra.mxu0 %v2383_v46  ;;  %1064 = vmatpush1.bf16.msra.mxu1 %v2385_v47  ;;  %v605_v46 = vld [vmem:[%s3608_s12 + $0x98] sm:$0xff]  ;;  %v588_v58 = vld [vmem:[%s3608_s12 + $0x10] sm:$0xff]  ;;  %v2372_v61 = vcombine.high %v596_v50, %v600_v51  ;;  %v2790_v15 = vld [vmem:[%s3624_s14 + $0xb0] sm:$0xff]  }
 0x110   : > { %1022 = vmatprep.subr.bf16.mxu0 %v2376_v48  ;;  %1065 = vmatprep.subr.bf16.mxu1 %v2378_v49  ;;  %v609_v47 = vld [vmem:[%s3608_s12 + $0xb8] sm:$0xff]  ;;  %v2390_v48 = vcombine.high %v613_v39, %v617_v40  ;;  %v2387_v49 = vcombine.low %v612_v35, %v616_v36  ;;  %v592_v59 = vld [vmem:[%s3608_s12 + $0x30] sm:$0xff]  ;;  %v2799_v24 = vld [vmem:[%s3624_s14 + $0x58] sm:$0xff]  }
 0x111   : > { %v2364_v3 = vcombine.high %v588_v58, %v592_v59  ;;  %v2795_v20 = vld [vmem:[%s3624_s14 + $0x60] sm:$0xff]   ;;  %v2802_v27 = vld [vmem:[%s3624_s14 + $0x98] sm:$0xff]   ;;  %v2803_v28 = vld [vmem:[%s3624_s14 + $0x50] sm:$0xff]  }
 0x112   : > { %v2798_v23 = vld [vmem:[%s3624_s14 + $0xa0] sm:$0xff]   ;;  %v2806_v31 = vld [vmem:[%s3624_s14 + $0x90] sm:$0xff]   ;;  %v2807_v32 = vld [vmem:[%s3624_s14 + $0x48] sm:$0xff]  }
 0x113   : > { %1023 = vmatpush1.bf16.msra.mxu0 %v2375_v54  ;;  %1066 = vmatpush1.bf16.msra.mxu1 %v2377_v55  ;;  %v597_v54 = vld [vmem:[%s3608_s12 + $0x58] sm:$0xff]  ;;  %v2811_v36 = vld [vmem:[%s3624_s14 + $0x40] sm:$0xff]   ;;  %v2815_v40 = vld [vmem:[%s3624_s14 + $0x178] sm:$0xff]  }
 0x114   : > { %1024 = vmatprep.subr.bf16.mxu0 %v2368_v56  ;;  %1067 = vmatprep.subr.bf16.mxu1 %v2370_v60  ;;  %v601_v55 = vld [vmem:[%s3608_s12 + $0x78] sm:$0xff]  ;;  %v2382_v56 = vcombine.high %v605_v46, %v609_v47  ;;  %v2381_v60 = vcombine.low %v605_v46, %v609_v47  ;;  %v2814_v39 = vld [vmem:[%s3624_s14 + $0x80] sm:$0xff]  }
 0x115   : > { %v2374_v0 = vcombine.high %v597_v54, %v601_v55  ;;  %v2810_v35 = vld [vmem:[%s3624_s14 + $0x88] sm:$0xff]  }
 0x117   : > { %1025 = vmatpush1.bf16.msra.mxu0 %v2367_v62  ;;  %1068 = vmatpush1.bf16.msra.mxu1 %v2369_v1  ;;  %v589_v62 = vld [vmem:[%s3608_s12 + $0x18] sm:$0xff]  ;;  %v2371_v1 = vcombine.low %v596_v50, %v600_v51 }
 0x118   : > { %1026 = vmatprep.subr.bf16.mxu0 %v2360_v2  ;;  %1069 = vmatprep.subr.bf16.mxu1 %v2362_v5  ;;  %v2373_v2 = vcombine.low %v597_v54, %v601_v55  ;;  %v2366_v4 = vcombine.high %v589_v62, %v593_v63  ;;  %v2363_v5 = vcombine.low %v588_v58, %v592_v59 }
 0x119   : > { %v2365_v6 = vcombine.low %v589_v62, %v593_v63 }
 0x11b   : > { %1027 = vmatpush1.bf16.msra.mxu0 %v2359_v8  ;;  %1070 = vmatpush1.bf16.msra.mxu1 %v2361_v12  ;;  %v2784_v8 = vld [vmem:[%s3624_s14 + $0xf8] sm:$0xff]   ;;  %v2787_v12 = vld [vmem:[%s3624_s14 + $0x70] sm:$0xff]  }
 0x11c   : > { %1098 = vmatprep.subr.bf16.mxu0 %v2420_v13  ;;  %1141 = vmatprep.subr.bf16.mxu1 %v2422_v16  ;;  %v2788_v13 = vld [vmem:[%s3624_s14 + $0xf0] sm:$0xff]   ;;  %v2791_v16 = vld [vmem:[%s3624_s14 + $0x68] sm:$0xff]  }
 0x11e   : > { %1045 = vmatmul.mubr.bf16.vlgmr.msra.gmra.mxu0 %v3696_v17  ;;  %1088 = vmatmul.mubr.bf16.vlgmr.msra.gmra.mxu1 %v3696_v17 }
 0x11f   : > { %1099 = vmatpush1.bf16.msra.mxu0 %v2419_v18  ;;  %1142 = vmatpush1.bf16.msra.mxu1 %v2421_v21  ;;  %v2793_v18 = vld [vmem:[%s3624_s14 + $0x28] sm:$0xff]   ;;  %v2796_v21 = vld [vmem:[%s3624_s14 + $0xe0] sm:$0xff]  }
 0x120   : > { %1100 = vmatprep.subr.bf16.mxu0 %v2412_v22  ;;  %1143 = vmatprep.subr.bf16.mxu1 %v2414_v25  ;;  %v2797_v22 = vld [vmem:[%s3624_s14 + $0x20] sm:$0xff]   ;;  %v2800_v25 = vld [vmem:[%s3624_s14 + $0xd8] sm:$0xff]  }
 0x121   : > { %1130 = vmatprep.mubr.bf16.mxu0 %v3269_v11  ;;  %1173 = vmatprep.mubr.bf16.mxu1 %v3269_v11  ;;  %v604_v11 = vld [vmem:[%s3608_s12 + $0x90] sm:$0xff] }
 0x122   : > { %v2380_v53 = vcombine.high %v604_v11, %v608_v43  ;;  %v2379_v57 = vcombine.low %v604_v11, %v608_v43 }
 0x123   : > { %1101 = vmatpush1.bf16.msra.mxu0 %v2411_v26  ;;  %1144 = vmatpush1.bf16.msra.mxu1 %v2413_v29  ;;  %v2801_v26 = vld [vmem:[%s3624_s14 + $0x18] sm:$0xff]   ;;  %v2804_v29 = vld [vmem:[%s3624_s14 + $0xd0] sm:$0xff]  }
 0x124   : > { %1102 = vmatprep.subr.bf16.mxu0 %v2404_v30  ;;  %1145 = vmatprep.subr.bf16.mxu1 %v2406_v33  ;;  %v2805_v30 = vld [vmem:[%s3624_s14 + $0x10] sm:$0xff]   ;;  %v2808_v33 = vld [vmem:[%s3624_s14 + $0xc8] sm:$0xff]  }
 0x127   : > { %1103 = vmatpush1.bf16.msra.mxu0 %v2403_v34  ;;  %1146 = vmatpush1.bf16.msra.mxu1 %v2405_v37  ;;  %v2809_v34 = vld [vmem:[%s3624_s14 + $0x8] sm:$0xff]   ;;  %v2812_v37 = vld [vmem:[%s3624_s14 + $0xc0] sm:$0xff]  }
 0x128   : > { %1104 = vmatprep.subr.bf16.mxu0 %v2396_v38  ;;  %1147 = vmatprep.subr.bf16.mxu1 %v2398_v41  ;;  %v2813_v38 = vld [vmem:[%s3624_s14] sm:$0xff]   ;;  %v2816_v41 = vld [vmem:[%s3624_s14 + $0x1f8] sm:$0xff]  }
 0x12b   : > { %1105 = vmatpush1.bf16.msra.mxu0 %v2395_v42  ;;  %1148 = vmatpush1.bf16.msra.mxu1 %v2397_v44  ;;  %v652_v42 = vlaneseq  ;;  %v3766_v44 = vld [vmem:[%s3615_s0] sm:$0xff] }
 0x12c   : > { %1106 = vmatprep.subr.bf16.mxu0 %v2388_v45  ;;  %1149 = vmatprep.subr.bf16.mxu1 %v2390_v48 }
 0x12d   : > { %v3762_v11 = vshrl.u32 %v652_v42, 7 }
 0x12f   : > { %1107 = vmatpush1.bf16.msra.mxu0 %v2387_v49  ;;  %1150 = vmatpush1.bf16.msra.mxu1 %v2389_v52  ;;  %v654_v43 = vsub.s32 0, %v3762_v11  ;;  %v662_v45 = vsub.s32 2, %v3762_v11  ;;  %v658_v46 = vsub.s32 1, %v3762_v11  ;;  %v666_v47 = vsub.s32 3, %v3762_v11 }
 0x130   : > { %1108 = vmatprep.subr.bf16.mxu0 %v2380_v53  ;;  %1151 = vmatprep.subr.bf16.mxu1 %v2382_v56 }
 0x131   : > { %v655_v48 = vrot.slane %v3766_v44, %v654_v43  ;;  %v663_v49 = vrot.slane %v3766_v44, %v662_v45  ;;  %v659_v50 = vrot.slane %v3766_v44, %v658_v46  ;;  %v667_v52 = vrot.slane %v3766_v44, %v666_v47 }
 0x133   : > { %1109 = vmatpush1.bf16.msra.mxu0 %v2379_v57  ;;  %1152 = vmatpush1.bf16.msra.mxu1 %v2381_v60 }
 0x134   : > { %1110 = vmatprep.subr.bf16.mxu0 %v2372_v61  ;;  %1153 = vmatprep.subr.bf16.mxu1 %v2374_v0 }
 0x137   : > { %1111 = vmatpush1.bf16.msra.mxu0 %v2371_v1  ;;  %1154 = vmatpush1.bf16.msra.mxu1 %v2373_v2 }
 0x138   : > { %1112 = vmatprep.subr.bf16.mxu0 %v2364_v3  ;;  %1155 = vmatprep.subr.bf16.mxu1 %v2366_v4 }
 0x13b   : > { %1113 = vmatpush1.bf16.msra.mxu0 %v2363_v5  ;;  %1156 = vmatpush1.bf16.msra.mxu1 %v2365_v6 }
 0x13c   : > { %2504 = vmatprep.subr.bf16.mxu0 %v2783_v7  ;;  %2526 = vmatprep.subr.bf16.mxu1 %v2784_v8 }
 0x13e   : > { %1131 = vmatmul.mubr.bf16.vlgmr.msra.gmra.mxu0 %v3696_v17  ;;  %1174 = vmatmul.mubr.bf16.vlgmr.msra.gmra.mxu1 %v3696_v17  ;;  %v2792_v17 = vld [vmem:[%s3624_s14 + $0xe8] sm:$0xff]  }
 0x13f   : > { %2505 = vmatpush3.bf16.msra.mxu0 %v2785_v9  ;;  %2527 = vmatpush3.bf16.msra.mxu1 %v2786_v10 }
 0x140   : > { %2506 = vmatprep.subr.bf16.mxu0 %v2787_v12  ;;  %2528 = vmatprep.subr.bf16.mxu1 %v2788_v13 }
 0x143   : > { %2507 = vmatpush3.bf16.msra.mxu0 %v2789_v14  ;;  %2529 = vmatpush3.bf16.msra.mxu1 %v2790_v15 }
 0x144   : > { %2508 = vmatprep.subr.bf16.mxu0 %v2791_v16  ;;  %2530 = vmatprep.subr.bf16.mxu1 %v2792_v17 }
 0x147   : > { %2509 = vmatpush3.bf16.msra.mxu0 %v2793_v18  ;;  %2531 = vmatpush3.bf16.msra.mxu1 %v2794_v19  ;;  %v670_v18 = vsub.s32 4, %v3762_v11  ;;  %v678_v19 = vsub.s32 6, %v3762_v11 }
 0x148   : > { %2510 = vmatprep.subr.bf16.mxu0 %v2795_v20  ;;  %2532 = vmatprep.subr.bf16.mxu1 %v2796_v21  ;;  %v674_v20 = vsub.s32 5, %v3762_v11 }
 0x14b   : > { %2511 = vmatpush3.bf16.msra.mxu0 %v2797_v22  ;;  %2533 = vmatpush3.bf16.msra.mxu1 %v2798_v23 }
 0x14c   : > { %2512 = vmatprep.subr.bf16.mxu0 %v2799_v24  ;;  %2534 = vmatprep.subr.bf16.mxu1 %v2800_v25 }
 0x14f   : > { %2513 = vmatpush3.bf16.msra.mxu0 %v2801_v26  ;;  %2535 = vmatpush3.bf16.msra.mxu1 %v2802_v27 }
 0x150   : > { %2514 = vmatprep.subr.bf16.mxu0 %v2803_v28  ;;  %2536 = vmatprep.subr.bf16.mxu1 %v2804_v29 }
 0x153   : > { %2515 = vmatpush3.bf16.msra.mxu0 %v2805_v30  ;;  %2537 = vmatpush3.bf16.msra.mxu1 %v2806_v31 }
 0x154   : > { %2516 = vmatprep.subr.bf16.mxu0 %v2807_v32  ;;  %2538 = vmatprep.subr.bf16.mxu1 %v2808_v33 }
 0x157   : > { %2517 = vmatpush3.bf16.msra.mxu0 %v2809_v34  ;;  %2539 = vmatpush3.bf16.msra.mxu1 %v2810_v35 }
 0x158   : > { %2518 = vmatprep.subr.bf16.mxu0 %v2811_v36  ;;  %2540 = vmatprep.subr.bf16.mxu1 %v2812_v37 }
 0x15b   : > { %2519 = vmatpush3.bf16.msra.mxu0 %v2813_v38  ;;  %2541 = vmatpush3.bf16.msra.mxu1 %v2814_v39 }
 0x15c   : > { %2548 = vmatprep.subr.bf16.mxu0 %v2815_v40  ;;  %2570 = vmatprep.subr.bf16.mxu1 %v2816_v41 }
 0x1de   : > { %v1046_v51 = vpop.f32.mrf.mxu0  ;;  %v1089_v54 = vpop.f32.mrf.mxu1 }
 0x1df   : > { %v1047_v53 = vadd.f32 %v1046_v51, %v655_v48  ;;  %v1090_v55 = vadd.f32 %v1089_v54, %v663_v49  ;;  %v671_v51 = vrot.slane %v3766_v44, %v670_v18 }
 0x1e0   : > { %v1048_v56 = vpop.f32.mrf.mxu0  ;;  %v1091_v59 = vpop.f32.mrf.mxu1 }
 0x1e1   : > { %v1200_v57 = vmul.f32 0.70710677, %v1047_v53  ;;  %v1049_v58 = vadd.f32 %v1048_v56, %v659_v50  ;;  %v1202_v60 = vmul.f32 0.70710677, %v1090_v55  ;;  %v1092_v61 = vadd.f32 %v1091_v59, %v667_v52  ;;  %v2818_v56 = vld [vmem:[%s3624_s14 + $0x1b8] sm:$0xff]  }
 0x1e2   : > { %v1050_v62 = vpop.f32.mrf.mxu0  ;;  %v1093_v1 = vpop.f32.mrf.mxu1  ;;  %v1184_v22 = vmul.f32 0.5, %v1047_v53  ;;  %v1186_v40 = vmul.f32 0.5, %v1090_v55  ;;  %v679_v55 = vrot.slane %v3766_v44, %v678_v19  ;;  %v675_v59 = vrot.slane %v3766_v44, %v674_v20  ;;  %v2826_v19 = vld [vmem:[%s3624_s14 + $0x1a8] sm:$0xff]   ;;  %v2827_v20 = vld [vmem:[%s3624_s14 + $0x160] sm:$0xff]  }
 0x1e3   : > { %2847 = verf.f32 %v1200_v57  ;;  %v1201_v63 = vmul.f32 0.70710677, %v1049_v58  ;;  %v1051_v0 = vadd.f32 %v1050_v62, %v655_v48  ;;  %v1203_v2 = vmul.f32 0.70710677, %v1092_v61  ;;  %v2819_v57 = vld [vmem:[%s3624_s14 + $0x170] sm:$0xff]  }
 0x1e4   : > { %2849 = verf.f32 %v1202_v60  ;;  %v1094_v3 = vadd.f32 %v1093_v1, %v663_v49  ;;  %v1052_v4 = vpop.f32.mrf.mxu0  ;;  %v1095_v7 = vpop.f32.mrf.mxu1  ;;  %v1185_v23 = vmul.f32 0.5, %v1049_v58  ;;  %v1187_v36 = vmul.f32 0.5, %v1092_v61  ;;  %v2820_v60 = vld [vmem:[%s3624_s14 + $0x1f0] sm:$0xff]  }
 0x1e5   : > { %2851 = verf.f32 %v1201_v63  ;;  %v1208_v5 = vmul.f32 0.70710677, %v1051_v0  ;;  %v1053_v6 = vadd.f32 %v1052_v4, %v659_v50  ;;  %v1096_v9 = vadd.f32 %v1095_v7, %v667_v52  ;;  %v2817_v52 = vld [vmem:[%s3624_s14 + $0x138] sm:$0xff]   ;;  %v2823_v4 = vld [vmem:[%s3624_s14 + $0x168] sm:$0xff]  }
 0x1e6   : > { %2853 = verf.f32 %v1203_v2  ;;  %v1210_v8 = vmul.f32 0.70710677, %v1094_v3  ;;  %v1192_v29 = vmul.f32 0.5, %v1051_v0  ;;  %v1194_v33 = vmul.f32 0.5, %v1094_v3  ;;  %v2821_v0 = vld [vmem:[%s3624_s14 + $0x130] sm:$0xff]   ;;  %v2824_v7 = vld [vmem:[%s3624_s14 + $0x1e8] sm:$0xff]  }
 0x1e7   : > { %2855 = verf.f32 %v1208_v5  ;;  %v1209_v10 = vmul.f32 0.70710677, %v1053_v6  ;;  %v1211_v12 = vmul.f32 0.70710677, %v1096_v9  ;;  %v1193_v34 = vmul.f32 0.5, %v1053_v6  ;;  %v2822_v3 = vld [vmem:[%s3624_s14 + $0x1b0] sm:$0xff]  }
 0x1e8   : > { %2857 = verf.f32 %v1210_v8  ;;  %v1195_v38 = vmul.f32 0.5, %v1096_v9  ;;  %v682_v48 = vsub.s32 7, %v3762_v11 }
 0x1e9   : > { %2859 = verf.f32 %v1209_v10 }
 0x1ea   : > { %2861 = verf.f32 %v1211_v12  ;;  %v683_v61 = vrot.slane %v3766_v44, %v682_v48  ;;  %v2842_v48 = vld [vmem:[%s3624_s14 + $0x188] sm:$0xff]  }
 0x1f0   : > { %v2848_v13 = vpop.eup %2847 }
 0x1f1   : > { %v2850_v14 = vpop.eup %2849  ;;  %v1232_v27 = vadd.f32 1.0, %v2848_v13 }
 0x1f2   : > { %v2852_v15 = vpop.eup %2851  ;;  %v1234_v32 = vadd.f32 1.0, %v2850_v14 }
 0x1f3   : > { %v2854_v16 = vpop.eup %2853  ;;  %v1233_v24 = vadd.f32 1.0, %v2852_v15  ;;  %v1248_v45 = vmul.f32 %v1232_v27, %v1184_v22  ;;  %v2825_v15 = vld [vmem:[%s3624_s14 + $0x128] sm:$0xff]  }
 0x1f4   : > { %v2856_v17 = vpop.eup %2855  ;;  %v1235_v28 = vadd.f32 1.0, %v2854_v16  ;;  %v1250_v49 = vmul.f32 %v1234_v32, %v1186_v40  ;;  %v2832_v32 = vld [vmem:[%s3624_s14 + $0x1d8] sm:$0xff]   ;;  %v2839_v40 = vld [vmem:[%s3624_s14 + $0x148] sm:$0xff]  }
 0x1f5   : > { %v2858_v21 = vpop.eup %2857  ;;  %v1240_v25 = vadd.f32 1.0, %v2856_v17  ;;  %v1249_v41 = vmul.f32 %v1233_v24, %v1185_v23  ;;  %v2828_v24 = vld [vmem:[%s3624_s14 + $0x1e0] sm:$0xff]  }
 0x1f6   : > { %v2860_v26 = vpop.eup %2859  ;;  %v1242_v30 = vadd.f32 1.0, %v2858_v21  ;;  %v1251_v46 = vmul.f32 %v1235_v28, %v1187_v36  ;;  %v2829_v28 = vld [vmem:[%s3624_s14 + $0x120] sm:$0xff]   ;;  %v2836_v36 = vld [vmem:[%s3624_s14 + $0x1d0] sm:$0xff]  }
 0x1f7   : > { %v2862_v31 = vpop.eup %2861  ;;  %v1241_v35 = vadd.f32 1.0, %v2860_v26  ;;  %v1256_v37 = vmul.f32 %v1240_v25, %v1192_v29 }
 0x1f8   : > { %v1243_v39 = vadd.f32 1.0, %v2862_v31  ;;  %v1258_v42 = vmul.f32 %v1242_v30, %v1194_v33  ;;  %v2830_v30 = vld [vmem:[%s3624_s14 + $0x1a0] sm:$0xff]   ;;  %v2831_v31 = vld [vmem:[%s3624_s14 + $0x158] sm:$0xff]  }
 0x1f9   : > { %v1257_v43 = vmul.f32 %v1241_v35, %v1193_v34  ;;  %v1266_v53 = vpack.c.bf16 %v1256_v37, %v1248_v45  ;;  %v2833_v33 = vld [vmem:[%s3624_s14 + $0x118] sm:$0xff]   ;;  %v2835_v35 = vld [vmem:[%s3624_s14 + $0x150] sm:$0xff]  }
 0x1fa   : > { %v1259_v47 = vmul.f32 %v1243_v39, %v1195_v38  ;;  %v1268_v58 = vpack.c.bf16 %v1258_v42, %v1250_v49  ;;  %v2834_v34 = vld [vmem:[%s3624_s14 + $0x198] sm:$0xff]   ;;  %v2837_v37 = vld [vmem:[%s3624_s14 + $0x110] sm:$0xff]   ;;  %v2840_v42 = vld [vmem:[%s3624_s14 + $0x1c8] sm:$0xff]  }
 0x1fb   : > { %v1267_v50 = vpack.c.bf16 %v1257_v43, %v1249_v41  ;;  %v2838_v39 = vld [vmem:[%s3624_s14 + $0x190] sm:$0xff]   ;;  %v2843_v49 = vld [vmem:[%s3624_s14 + $0x140] sm:$0xff]  }
 0x1fc   : > { %v1269_v54 = vpack.c.bf16 %v1259_v47, %v1251_v46  ;;  %v2841_v46 = vld [vmem:[%s3624_s14 + $0x108] sm:$0xff]  }
 0x1fd   : > { %1818 = vmatprep.mubr.bf16.mxu0 %v1267_v50 }
 0x1fe   : > { %1859 = vmatprep.mubr.bf16.mxu1 %v1269_v54  ;;  %v1132_v11 = vpop.f32.mrf.mxu0  ;;  %1819 = vmatmul.mubr.bf16.vlgmr.msra.gmra.mxu0 %v1266_v53  ;;  %v1175_v63 = vpop.f32.mrf.mxu1 }
 0x1ff   : > { %v3787_v62 = vadd.f32 %v1132_v11, %v671_v51  ;;  %1860 = vmatmul.mubr.bf16.vlgmr.msra.gmra.mxu1 %v1268_v58  ;;  %2549 = vmatpush3.bf16.msra.mxu0 %v2817_v52  ;;  %v3790_v1 = vadd.f32 %v1175_v63, %v679_v55 }
 0x200   : > { %2571 = vmatpush3.bf16.msra.mxu1 %v2818_v56  ;;  %v1134_v2 = vpop.f32.mrf.mxu0  ;;  %2550 = vmatprep.subr.bf16.mxu0 %v2819_v57  ;;  %v1177_v44 = vpop.f32.mrf.mxu1 }
 0x201   : > { %v1204_v5 = vmul.f32 0.70710677, %v3787_v62  ;;  %v3795_v6 = vadd.f32 %v1134_v2, %v675_v59  ;;  %2572 = vmatprep.subr.bf16.mxu1 %v2820_v60  ;;  %v1206_v8 = vmul.f32 0.70710677, %v3790_v1  ;;  %v3799_v9 = vadd.f32 %v1177_v44, %v683_v61  ;;  %v2845_v2 = vld [vmem:[%s3624_s14 + $0x100] sm:$0xff]  }
 0x202   : > { %v1136_v10 = vpop.f32.mrf.mxu0  ;;  %v1179_v14 = vpop.f32.mrf.mxu1  ;;  %v2846_v44 = vld [vmem:[%s3624_s14 + $0x180] sm:$0xff]  }
 0x203   : > { %2863 = verf.f32 %v1204_v5  ;;  %v1205_v12 = vmul.f32 0.70710677, %v3795_v6  ;;  %v3802_v13 = vadd.f32 %v1136_v10, %v671_v51  ;;  %2551 = vmatpush3.bf16.msra.mxu0 %v2821_v0  ;;  %v1207_v16 = vmul.f32 0.70710677, %v3799_v9 }
 0x204   : > { %2865 = verf.f32 %v1206_v8  ;;  %v3806_v17 = vadd.f32 %v1179_v14, %v679_v55  ;;  %2573 = vmatpush3.bf16.msra.mxu1 %v2822_v3  ;;  %v1138_v18 = vpop.f32.mrf.mxu0  ;;  %2552 = vmatprep.subr.bf16.mxu0 %v2823_v4  ;;  %v1181_v23 = vpop.f32.mrf.mxu1  ;;  %v1188_v51 = vmul.f32 0.5, %v3787_v62  ;;  %v1189_v52 = vmul.f32 0.5, %v3795_v6  ;;  %v2844_v55 = vld [vmem:[%s3624_s14 + $0x1c0] sm:$0xff]  }
 0x205   : > { %2867 = verf.f32 %v1205_v12  ;;  %v1212_v21 = vmul.f32 0.70710677, %v3802_v13  ;;  %v1139_v22 = vadd.f32 %v1138_v18, %v675_v59  ;;  %2574 = vmatprep.subr.bf16.mxu1 %v2824_v7  ;;  %v3813_v26 = vadd.f32 %v1181_v23, %v683_v61 }
 0x206   : > { %2869 = verf.f32 %v1207_v16  ;;  %v1214_v25 = vmul.f32 0.70710677, %v3806_v17  ;;  %v1196_v59 = vmul.f32 0.5, %v3802_v13  ;;  %v1198_v63 = vmul.f32 0.5, %v3806_v17 }
 0x207   : > { %2871 = verf.f32 %v1212_v21  ;;  %v1213_v27 = vmul.f32 0.70710677, %v1139_v22  ;;  %2553 = vmatpush3.bf16.msra.mxu0 %v2825_v15  ;;  %v1215_v29 = vmul.f32 0.70710677, %v3813_v26  ;;  %v1197_v0 = vmul.f32 0.5, %v1139_v22 }
 0x208   : > { %2873 = verf.f32 %v1214_v25  ;;  %2575 = vmatpush3.bf16.msra.mxu1 %v2826_v19  ;;  %2554 = vmatprep.subr.bf16.mxu0 %v2827_v20  ;;  %v1191_v3 = vmul.f32 0.5, %v3799_v9  ;;  %v1199_v5 = vmul.f32 0.5, %v3813_v26  ;;  %v1190_v7 = vmul.f32 0.5, %v3790_v1 }
 0x209   : > { %2875 = verf.f32 %v1213_v27  ;;  %2576 = vmatprep.subr.bf16.mxu1 %v2828_v24 }
 0x20a   : > { %2877 = verf.f32 %v1215_v29 }
 0x20b   : > { %2555 = vmatpush3.bf16.msra.mxu0 %v2829_v28 }
 0x20c   : > { %2577 = vmatpush3.bf16.msra.mxu1 %v2830_v30  ;;  %2556 = vmatprep.subr.bf16.mxu0 %v2831_v31 }
 0x20d   : > { %2578 = vmatprep.subr.bf16.mxu1 %v2832_v32 }
 0x20f   : > { %2557 = vmatpush3.bf16.msra.mxu0 %v2833_v33 }
 0x210   : > { %v2864_v38 = vpop.eup %2863  ;;  %2579 = vmatpush3.bf16.msra.mxu1 %v2834_v34  ;;  %2558 = vmatprep.subr.bf16.mxu0 %v2835_v35 }
 0x211   : > { %v2866_v41 = vpop.eup %2865  ;;  %2580 = vmatprep.subr.bf16.mxu1 %v2836_v36  ;;  %v1236_v57 = vadd.f32 1.0, %v2864_v38 }
 0x212   : > { %v2868_v43 = vpop.eup %2867  ;;  %v1238_v61 = vadd.f32 1.0, %v2866_v41  ;;  %v1264_v41 = vld [vmem:[#allocation3 + $0x8] sm:$0xff] }
 0x213   : > { %v2870_v45 = vpop.eup %2869  ;;  %2559 = vmatpush3.bf16.msra.mxu0 %v2837_v37  ;;  %v1237_v53 = vadd.f32 1.0, %v2868_v43  ;;  %v1252_v13 = vmul.f32 %v1236_v57, %v1188_v51  ;;  %v1265_v51 = vld [vmem:[#allocation3] sm:$0xff] }
 0x214   : > { %v2872_v47 = vpop.eup %2871  ;;  %2581 = vmatpush3.bf16.msra.mxu1 %v2838_v39  ;;  %2560 = vmatprep.subr.bf16.mxu0 %v2839_v40  ;;  %v1239_v58 = vadd.f32 1.0, %v2870_v45  ;;  %v1254_v16 = vmul.f32 %v1238_v61, %v1190_v7 }
 0x215   : > { %v2874_v50 = vpop.eup %2873  ;;  %v1244_v54 = vadd.f32 1.0, %v2872_v47  ;;  %2582 = vmatprep.subr.bf16.mxu1 %v2840_v42  ;;  %v1253_v8 = vmul.f32 %v1237_v53, %v1189_v52 }
 0x216   : > { %v2876_v56 = vpop.eup %2875  ;;  %v1246_v60 = vadd.f32 1.0, %v2874_v50  ;;  %v1255_v14 = vmul.f32 %v1239_v58, %v1191_v3 }
 0x217   : > { %v2878_v11 = vpop.eup %2877  ;;  %v1245_v62 = vadd.f32 1.0, %v2876_v56  ;;  %2561 = vmatpush3.bf16.msra.mxu0 %v2841_v46  ;;  %v1260_v4 = vmul.f32 %v1244_v54, %v1196_v59 }
 0x218   : > { %v1247_v6 = vadd.f32 1.0, %v2878_v11  ;;  %2583 = vmatpush3.bf16.msra.mxu1 %v2842_v48  ;;  %2562 = vmatprep.subr.bf16.mxu0 %v2843_v49  ;;  %v1262_v10 = vmul.f32 %v1246_v60, %v1198_v63 }
 0x219   : > { %v1261_v12 = vmul.f32 %v1245_v62, %v1197_v0  ;;  %2584 = vmatprep.subr.bf16.mxu1 %v2844_v55  ;;  %v1270_v17 = vpack.c.bf16 %v1260_v4, %v1252_v13 }
 0x21a   : > { %v1263_v15 = vmul.f32 %v1247_v6, %v1199_v5  ;;  %v1272_v19 = vpack.c.bf16 %v1262_v10, %v1254_v16 }
 0x21b   : > { %2563 = vmatpush3.bf16.msra.mxu0 %v2845_v2  ;;  %v1271_v9 = vpack.c.bf16 %v1261_v12, %v1253_v8 }
 0x21c   : > { %2585 = vmatpush3.bf16.msra.mxu1 %v2846_v44  ;;  %v1273_v18 = vpack.c.bf16 %v1263_v15, %v1255_v14 }
 0x21d   : > { %1900 = vmatprep.mubr.bf16.mxu0 %v1271_v9 }
 0x21e   : > { %1941 = vmatprep.mubr.bf16.mxu1 %v1273_v18  ;;  %1901 = vmatmul.mubr.bf16.vlgmr.msra.gmra.mxu0 %v1270_v17 }
 0x21f   : > { %1942 = vmatmul.mubr.bf16.vlgmr.msra.gmra.mxu1 %v1272_v19 }
 0x2be   : > { %v2520_v1 = vpop.f32.mrf.mxu0 }
 0x2bf   : > { %v2542_v20 = vpop.f32.mrf.mxu1 }
 0x2c0   : > { %v2521_v21 = vpop.f32.mrf.mxu0 }
 0x2c1   : > { %v2543_v22 = vpop.f32.mrf.mxu1  ;;  %v2522_v26 = vadd.f32 %v2521_v21, %v2520_v1 }
 0x2c2   : > { %v2523_v23 = vpop.f32.mrf.mxu0  ;;  %v2544_v27 = vadd.f32 %v2543_v22, %v2542_v20 }
 0x2c3   : > { %v2545_v24 = vpop.f32.mrf.mxu1 }
 0x2c4   : > { %v2524_v25 = vpop.f32.mrf.mxu0  ;;  %v1862_v32 = vadd.f32 %v2544_v27, %v2522_v26 }
 0x2c5   : > { %v2546_v28 = vpop.f32.mrf.mxu1  ;;  %v2525_v33 = vadd.f32 %v2524_v25, %v2523_v23 }
 0x2c6   : > { %v2547_v34 = vadd.f32 %v2546_v28, %v2545_v24 }
 0x2c8   : > { %v1865_v43 = vadd.f32 %v2547_v34, %v2525_v33 }
 0x2de   : > { %v2564_v29 = vpop.f32.mrf.mxu0 }
 0x2df   : > { %v2586_v30 = vpop.f32.mrf.mxu1 }
 0x2e0   : > { %v2565_v31 = vpop.f32.mrf.mxu0 }
 0x2e1   : > { %v2566_v35 = vadd.f32 %v2565_v31, %v2564_v29  ;;  %v2587_v36 = vpop.f32.mrf.mxu1 }
 0x2e2   : > { %v2567_v37 = vpop.f32.mrf.mxu0  ;;  %v2588_v39 = vadd.f32 %v2587_v36, %v2586_v30 }
 0x2e3   : > { %v1903_v38 = vadd.f32 %v2566_v35, %v1862_v32  ;;  %v2589_v40 = vpop.f32.mrf.mxu1 }
 0x2e4   : > { %v2568_v42 = vpop.f32.mrf.mxu0 }
 0x2e5   : > { %v1944_v45 = vadd.f32 %v2588_v39, %v1903_v38  ;;  %v2569_v46 = vadd.f32 %v2568_v42, %v2567_v37  ;;  %v2590_v47 = vpop.f32.mrf.mxu1 }
 0x2e6   : > { %v2591_v50 = vadd.f32 %v2590_v47, %v2589_v40 }
 0x2e7   : > { %v1950_v48 = vadd.f32 %v1944_v45, %v1264_v41  ;;  %v1906_v49 = vadd.f32 %v2569_v46, %v1865_v43 }
 0x2e9   : > { %1952 = vst [vmem:[#allocation3 + $0x8] sm:$0xff] %v1950_v48  ;;  %v1947_v52 = vadd.f32 %v2591_v50, %v1906_v49  ;;  %1957 = sbr.rel (%p2487_p0) target bundleno = 1066 (0x42a), region = 100 }
 0x2eb   : > { %v1951_v53 = vadd.f32 %v1947_v52, %v1265_v51 }
 0x2ed   : > { %1953 = vst [vmem:[#allocation3] sm:$0xff] %v1951_v53 }
 0x2ee   : > { %v2488_v55 = vld [vmem:[%s488_s16] ss:$0 sm:$0xff] }
 0x2ef   : > { %v2489_v10 = vld [vmem:[%s496_s8] ss:$0 sm:$0xff] }
 0x2f0   : > { %v1958_v54 = vld [vmem:[#allocation3 + $0x8] sm:$0xff]  ;;  %v2490_v13 = vld [vmem:[%s504_s29] ss:$0 sm:$0xff] }
 0x2f1   : > { %v1967_v57 = vadd.f32 %v2488_v55, %v1958_v54 }
 0x2f3   : > { %1971 = vadd.xlane.f32.xlu0 %v1967_v57 }
 0x2f4   : > { %v1959_v56 = vld [vmem:[#allocation3] sm:$0xff] }
 0x2f5   : > { %v1968_v58 = vadd.f32 %v2488_v55, %v1959_v56 }
 0x2f7   : > { %1973 = vadd.xlane.f32.xlu0 %v1968_v58 }
 0x37c   : > { %v1972_v59 = vpop.xlane.xlu0 %1971 }
 0x37d   : > { %v1976_v60 = vmul.f32 0.0078125, %v1972_v59 }
 0x37f   : > { %v1978_v11 = vsub.f32 %v1967_v57, %v1976_v60 }
 0x380   : > { %v1974_v61 = vpop.xlane.xlu0 %1973 }
 0x381   : > { %v1977_v63 = vmul.f32 0.0078125, %v1974_v61  ;;  %v1980_v0 = vmul.f32 %v1978_v11, %v1978_v11 }
 0x383   : > { %v1979_v62 = vsub.f32 %v1968_v58, %v1977_v63  ;;  %1982 = vadd.xlane.f32.xlu1 %v1980_v0 }
 0x385   : > { %v1981_v2 = vmul.f32 %v1979_v62, %v1979_v62 }
 0x387   : > { %1984 = vadd.xlane.f32.xlu1 %v1981_v2 }
 0x40c   : > { %v1983_v3 = vpop.xlane.xlu1 %1982 }
 0x40d   : > { %v1986_v4 = vmul.f32 0.0078125, %v1983_v3 }
 0x40f   : > { %v1988_v5 = vadd.f32 1e-05, %v1986_v4 }
 0x410   : > { %v1985_v6 = vpop.xlane.xlu1 %1984 }
 0x411   : > { %2879 = vrsqrt.f32 %v1988_v5  ;;  %v1987_v44 = vmul.f32 0.0078125, %v1985_v6 }
 0x413   : > { %v1989_v7 = vadd.f32 1e-05, %v1987_v44 }
 0x415   : > { %2881 = vrsqrt.f32 %v1989_v7 }
 0x41e   : > { %v2880_v8 = vpop.eup %2879 }
 0x41f   : > { %v1992_v12 = vmul.f32 %v2880_v8, %v1978_v11 }
 0x421   : > { %v2000_v14 = vmul.f32 %v2489_v10, %v1992_v12 }
 0x422   : > { %v2882_v15 = vpop.eup %2881 }
 0x423   : > { %v2008_v16 = vadd.f32 %v2490_v13, %v2000_v14  ;;  %v1993_v9 = vmul.f32 %v2882_v15, %v1979_v62 }
 0x425   : > { %2010 = vst [vmem:[#allocation2] sm:$0xff] %v2008_v16  ;;  %v2001_v17 = vmul.f32 %v2489_v10, %v1993_v9 }
 0x427   : > { %v2009_v18 = vadd.f32 %v2490_v13, %v2001_v17 }
 0x429   : > { %2011 = vst [vmem:[#allocation2 + $0x8] sm:$0xff] %v2009_v18 }
 0x42a PF: > { %s3994_s12 = sld [smem:[#allocation29_spill]] }
 0x430   : > { %p2012_p4 = scmp.eq.s32.totalorder %s3994_s12, 1 }
 0x432   : > { %p2013_p12 = pnand %p2012_p4, %p1954_p11 }
 0x434   : > { %2016 = sbr.rel (%p2013_p12) target bundleno = 1328 (0x530), region = 104 }
 0x439   : > { %v2883_v19 = vld [vmem:[#allocation15 + $0x38] sm:$0xff]   ;;  %v3270_v1 = vmov 0.0   ;;  %v2884_v20 = vld [vmem:[#allocation15 + $0x30] sm:$0xff]   ;;  %vm3271_vm0 = vmmov 0   ;;  %v2885_v21 = vld [vmem:[#allocation15 + $0x28] sm:$0xff]  }
 0x43a   : > { %2601 = vmatprep.subr.bf16.mxu0 %v3270_v1  ;;  %2617 = vmatprep.mubr.msk.bf16.mxu0 %vm3271_vm0, %v3270_v1  ;;  %v2886_v22 = vld [vmem:[#allocation15 + $0x20] sm:$0xff]   ;;  %v2887_v23 = vld [vmem:[#allocation15 + $0x18] sm:$0xff]   ;;  %v2888_v24 = vld [vmem:[#allocation15 + $0x10] sm:$0xff]  }
 0x43b   : > { %2602 = vmatpush3.bf16.msra.mxu0 %v2883_v19  ;;  %v2889_v25 = vld [vmem:[#allocation15 + $0x8] sm:$0xff]   ;;  %v2890_v26 = vld [vmem:[#allocation15] sm:$0xff]   ;;  %v2018_v28 = vld [vmem:[#allocation2 + $0x8] sm:$0xff] }
 0x43c   : > { %2603 = vmatprep.subr.bf16.mxu0 %v3270_v1  ;;  %v2017_v27 = vld [vmem:[#allocation2] sm:$0xff]  ;;  %v2491_v30 = vld [vmem:[#allocation16] ss:$0 sm:$0xff] }
 0x43d   : > { %v2019_v29 = vpack.c.bf16 %v2018_v28, %v2017_v27 }
 0x43f   : > { %2604 = vmatpush3.bf16.msra.mxu0 %v2884_v20 }
 0x440   : > { %2605 = vmatprep.subr.bf16.mxu0 %v3270_v1 }
 0x443   : > { %2606 = vmatpush3.bf16.msra.mxu0 %v2885_v21 }
 0x444   : > { %2607 = vmatprep.subr.bf16.mxu0 %v3270_v1 }
 0x447   : > { %2608 = vmatpush3.bf16.msra.mxu0 %v2886_v22 }
 0x448   : > { %2609 = vmatprep.subr.bf16.mxu0 %v3270_v1 }
 0x44b   : > { %2610 = vmatpush3.bf16.msra.mxu0 %v2887_v23 }
 0x44c   : > { %2611 = vmatprep.subr.bf16.mxu0 %v3270_v1 }
 0x44f   : > { %2612 = vmatpush3.bf16.msra.mxu0 %v2888_v24 }
 0x450   : > { %2613 = vmatprep.subr.bf16.mxu0 %v3270_v1 }
 0x453   : > { %2614 = vmatpush3.bf16.msra.mxu0 %v2889_v25 }
 0x454   : > { %2615 = vmatprep.subr.bf16.mxu0 %v3270_v1 }
 0x457   : > { %2616 = vmatpush3.bf16.msra.mxu0 %v2890_v26 }
 0x45a   : > { %2618 = vmatmul.mubr.bf16.vlgmr.msra.gmra.mxu0 %v2019_v29 }
 0x51a   : > { %v2125_v31 = vpop.f32.mrf.mxu0 }
 0x51b   : > { %v2126_v32 = vadd.f32 %v2491_v30, %v2125_v31 }
 0x51c   : > { %v2619_v33 = vpop.f32.mrf.mxu0 }
 0x51d   : > { %2891 = vtanh.f32 %v2126_v32 }
 0x51e   : > { %v2128_v34 = vpop.f32.mrf.mxu0 }
 0x51f   : > { %v2129_v35 = vadd.f32 %v2491_v30, %v2128_v34 }
 0x520   : > { %v2620_v36 = vpop.f32.mrf.mxu0 }
 0x521   : > { %2893 = vtanh.f32 %v2129_v35 }
 0x52a   : > { %v2892_v37 = vpop.eup %2891 }
 0x52b   : > { %2134 = vst [vmem:[#allocation18] sm:$0xff] %v2892_v37 }
 0x52e   : > { %v2894_v38 = vpop.eup %2893 }
 0x52f   : > { %2135 = vst [vmem:[#allocation18 + $0x8] sm:$0xff] %v2894_v38 }
 0x530 PF: > { %p2679_p5 = scmp.eq.s32.totalorder %s3381_s20, 5  ;;  %s3272_s30 = smov [#allocation18]  }
 0x531   : > { %s2142_s22 = sshll.u32 %s3272_s30, 4  ;;  %s2143_s22 = int_to_ptr.vmem [resolvable:$true] %s2142_s22 }
 0x532   : > { %s3115_s0 = scalar_lea.vmem %s2143_s22, 256  ;;  %p3122_p1 = scmp.lt.s32.totalorder %s2143_s22, %s2143_s22 }
 0x533   : > { %p3116_p9 = scmp.ne.s32.totalorder %s2143_s22, %s3115_s0  ;;  %p3123_p10 = scmp.lt.s32.totalorder %s3115_s0, %s3115_s0 }
 0x535   : > { %p3117_p13 = pnand %p3116_p9, %p2679_p5  ;;  %p3124_p2 = por %p3123_p10, %p3122_p1 }
 0x537   : > { %p3118_p8 = pneg %p3117_p13 }
 0x539   : > { %p3125_p6 = pnand %p3124_p2, %p3118_p8 }
 0x53b   : > { %3128 = shalt.err (!%p3125_p6)
}
 0x53c   : > { %s3273_s28 = smov 128   ;;  %s3274_s14 = smov 8  }
 0x53d   : > { %s3996_s8 = sld [smem:[#allocation43_spill]] }
 0x543   : > { %2645 = dma.vmem_to_hbm [thread:$0]  (%p2679_p5), %s2143_s22, 256, %s3996_s8, [#allocation6], %s3273_s28, %s3273_s28, %s3274_s14  }
 0x544   : > { %3208 = dma.done.wait (%p2679_p5), [#allocation6], 256  }
 0x545   : > { %3210 = vsyncadd (%p2679_p5), [#allocation6], 4294967040 }
 0x546 PF: > { %s33_s19 = sadd.s32 1, %s3253_s19   ;;  %s3997_s12 = sld [smem:[#allocation26_spill]] }
 0x547   : > { %p30_p7 = scmp.ge.s32.totalorder %s33_s19, 8   ;;  %s3998_s13 = sld [smem:[#allocation27_spill]] }
 0x548   : > { %s3999_s14 = sld [smem:[#allocation35_spill]]  ;;  %s4002_s30 = smov %s3217_s10 }
 0x549   : > { %s4000_s21 = sld [smem:[#allocation32_spill]]  ;;  %s4003_s10 = smov %s3221_s11 }
 0x54a   : > { %s4001_s29 = sld [smem:[#allocation33_spill]]  ;;  %s4004_s11 = smov %s3507_s7 }
 0x54b   : > { %s4005_s15 = smov %s3245_s17  ;;  %s4006_s16 = smov %s3249_s18 }
 0x54c   :  { %32 = sbr.rel (!%p30_p7) target bundleno = 23 (0x17), region = 178 }
 0x54f   : > { %s4007_s17 = smov %s4000_s21 }
 0x550   : > { %s4008_s18 = smov %s4001_s29 }
 0x551   :  { %2158 = vsyncpa [#allocation5], 1 }
 0x552   :  { %2160 = vsyncpa [#allocation5 + $0x1], 1 }
 0x553   :  { %2161 = vsyncpa [#allocation8], 1 }
 0x554   :  { %2163 = vsyncpa [#allocation8 + $0x1], 1 }
 0x555   :  { %2164 = vsyncpa [#allocation11], 1 }
 0x556   :  { %2166 = vsyncpa [#allocation11 + $0x1], 1 }
 0x557   :  { %2167 = vsyncpa [#allocation14], 1 }
 0x558   :  { %2169 = vsyncpa [#allocation14 + $0x1], 1 }
 0x559   :  { %2170 = vsyncpa [#allocation17], 1 }
 0x55a   :  { %2171 = vsyncpa [#allocation6], 1 }
 0x55b   :  { %2173 = vsyncpa [#allocation6 + $0x1], 1 }

</bundles_post_ra>
